<compile_context>
chip_gen: v5e
topology: v5e:2x2
jax: 0.10.0
libtpu: 0.0.40
codegen_flags: <defaults>
</compile_context>

<pallas_src>
import functools

import jax
import jax.numpy as jnp
from jax.experimental import pallas as pl
from jax.experimental.pallas import tpu as pltpu

LATENT = 100
LATENT_PAD = 128           # pad K of layer 1 to one full 128-wide MXU pass
HIDDEN = (128, 256, 512)
OUT = 28 * 28              # 784
OUT_PAD = 896              # 7 * 128 -> lane-dense output stores


def _leaky_relu(x, slope=0.2):
    return jnp.where(x > 0, x, slope * x)


def _round_up(n, m):
    return (n + m - 1) // m * m


def generator_kernel(x_ref,
                     w1_ref, b1_ref,
                     w2_ref, b2_ref,
                     w3_ref, b3_ref,
                     w4_ref, b4_ref,
                     o_ref):
    # Layer 1: (TB,128)bf16 @ (128,128)bf16 -> f32
    h = jnp.dot(x_ref[...], w1_ref[...], preferred_element_type=jnp.float32)
    h = _leaky_relu(h + b1_ref[...])
    # Layer 2: (TB,128) @ (128,256)
    h = jnp.dot(h.astype(jnp.bfloat16), w2_ref[...],
                preferred_element_type=jnp.float32)
    h = _leaky_relu(h + b2_ref[...])
    # Layer 3: (TB,256) @ (256,512)
    h = jnp.dot(h.astype(jnp.bfloat16), w3_ref[...],
                preferred_element_type=jnp.float32)
    h = _leaky_relu(h + b3_ref[...])
    # Layer 4: (TB,512) @ (512,896) + Tanh   (padded cols are zero -> tanh(b)=0,
    # sliced off in the wrapper)
    h = jnp.dot(h.astype(jnp.bfloat16), w4_ref[...],
                preferred_element_type=jnp.float32)
    o_ref[...] = jnp.tanh(h + b4_ref[...]).astype(o_ref.dtype)


def prepare_params(params):
    """Pad + cast the (in,out)-layout params for the kernel (bf16 weights)."""
    w1 = jnp.pad(params["w1"], ((0, LATENT_PAD - LATENT), (0, 0)))
    w4 = jnp.pad(params["w4"], ((0, 0), (0, OUT_PAD - OUT)))
    b4 = jnp.pad(params["b4"], ((0, 0), (0, OUT_PAD - OUT)))
    return (w1.astype(jnp.bfloat16), params["b1"].astype(jnp.float32),
            params["w2"].astype(jnp.bfloat16), params["b2"].astype(jnp.float32),
            params["w3"].astype(jnp.bfloat16), params["b3"].astype(jnp.float32),
            w4.astype(jnp.bfloat16), b4.astype(jnp.float32))


@functools.partial(jax.jit, static_argnames=("tb",))
def generator_forward(x, params, *, tb=256):
    """x: (B, 100) float32. params: dict w1..w4 (in,out), b1..b4 (1,out)."""
    B = x.shape[0]
    # Shrink the batch tile for tiny batches; keep it a multiple of 8 sublanes.
    tb = min(tb, _round_up(max(B, 1), 8))
    b_pad = _round_up(B, tb)
    # Zero-pad latent 100 -> 128 and batch -> tile multiple; bf16 operands.
    x_p = jnp.pad(x, ((0, b_pad - B), (0, LATENT_PAD - x.shape[1])))
    x_p = x_p.astype(jnp.bfloat16)

    kparams = prepare_params(params)
    w1, b1, w2, b2, w3, b3, w4, b4 = kparams

    def resident(a):
        # Full-array block, same block every grid step -> stays in VMEM.
        return pl.BlockSpec(a.shape, lambda i: (0, 0))

    in_specs = [
        pl.BlockSpec((tb, LATENT_PAD), lambda i: (i, 0)),   # x batch tile
        resident(w1), resident(b1),
        resident(w2), resident(b2),
        resident(w3), resident(b3),
        resident(w4), resident(b4),
    ]
    out_specs = pl.BlockSpec((tb, OUT_PAD), lambda i: (i, 0))

    flops = 2 * b_pad * (LATENT_PAD * 128 + 128 * 256 + 256 * 512
                         + 512 * OUT_PAD)
    bytes_accessed = (x_p.size * x_p.dtype.itemsize
                      + sum(a.size * a.dtype.itemsize for a in kparams)
                      + b_pad * OUT_PAD * 4)

    out = pl.pallas_call(
        generator_kernel,
        out_shape=jax.ShapeDtypeStruct((b_pad, OUT_PAD), jnp.float32),
        grid=(b_pad // tb,),
        in_specs=in_specs,
        out_specs=out_specs,
        compiler_params=pltpu.CompilerParams(
            dimension_semantics=("parallel",)),
        cost_estimate=pl.CostEstimate(
            flops=flops,
            transcendentals=b_pad * OUT_PAD,       # tanh
            bytes_accessed=bytes_accessed),
    )(x_p, *kparams)

    # Drop batch padding and the zero-padded output columns (XLA slice, cheap).
    return out[:B, :OUT]


def init_params(key):
    """Deterministic synthetic parameters matching the PyTorch layer shapes.

    PyTorch nn.Linear(in, out) stores weight (out, in); here we store the
    transpose (in, out) so the kernel computes x @ W directly.
    """
    dims = [LATENT, 128, 256, 512, OUT]
    params = {}
    keys = jax.random.split(key, 2 * (len(dims) - 1))
    for i in range(len(dims) - 1):
        fan_in, fan_out = dims[i], dims[i + 1]
        bound = 1.0 / (fan_in ** 0.5)  # PyTorch default uniform bound
        params[f"w{i+1}"] = jax.random.uniform(
            keys[2 * i], (fan_in, fan_out), jnp.float32, -bound, bound)
        params[f"b{i+1}"] = jax.random.uniform(
            keys[2 * i + 1], (1, fan_out), jnp.float32, -bound, bound)
    return params


def reference_forward(x, params):
    """Pure-JAX f32 reference (exact PyTorch semantics)."""
    h = x
    for i in range(1, 4):
        h = jnp.dot(h, params[f"w{i}"]) + params[f"b{i}"]
        h = jnp.where(h > 0, h, 0.2 * h)
    h = jnp.dot(h, params["w4"]) + params["b4"]
    return jnp.tanh(h)


def reference_forward_bf16(x, params):
    """Pure-JAX reference matching the kernel's bf16-operand/f32-accum numerics."""
    h = x.astype(jnp.bfloat16)
    for i in range(1, 5):
        h = jnp.dot(h, params[f"w{i}"].astype(jnp.bfloat16),
                    preferred_element_type=jnp.float32) + params[f"b{i}"]
        if i < 4:
            h = jnp.where(h > 0, h, 0.2 * h).astype(jnp.bfloat16)
    return jnp.tanh(h)


if __name__ == "__main__":
    key = jax.random.PRNGKey(0)
    k_param, k_x = jax.random.split(key)
    params = init_params(k_param)

    B = 2
    x = jax.random.normal(k_x, (B, LATENT), jnp.float32)  # latent noise

    out = jax.block_until_ready(generator_forward(x, params))
    assert out.shape == (B, OUT), out.shape

    ref_bf16 = reference_forward_bf16(x, params)
    ref_f32 = reference_forward(x, params)
    assert jnp.allclose(out, ref_bf16, atol=2e-3, rtol=2e-3), (
        float(jnp.max(jnp.abs(out - ref_bf16))))
    assert jnp.allclose(out, ref_f32, atol=5e-2), (
        float(jnp.max(jnp.abs(out - ref_f32))))

    print("KERNEL_OK")
</pallas_src>

<mosaic_0001>
module attributes {stable_mosaic.version = 11 : i64} {
  func.func @generator_kernel(%arg0: i32, %arg1: memref<8x128xbf16, #tpu.memory_space<vmem>>, %arg2: memref<128x128xbf16, #tpu.memory_space<vmem>>, %arg3: memref<1x128xf32, #tpu.memory_space<vmem>>, %arg4: memref<128x256xbf16, #tpu.memory_space<vmem>>, %arg5: memref<1x256xf32, #tpu.memory_space<vmem>>, %arg6: memref<256x512xbf16, #tpu.memory_space<vmem>>, %arg7: memref<1x512xf32, #tpu.memory_space<vmem>>, %arg8: memref<512x896xbf16, #tpu.memory_space<vmem>>, %arg9: memref<1x896xf32, #tpu.memory_space<vmem>>, %arg10: memref<8x896xf32, #tpu.memory_space<vmem>>) attributes {dimension_semantics = [#tpu.dimension_semantics<parallel>], iteration_bounds = array<i64: 1>, scalar_prefetch = 0 : i64, scratch_operands = 0 : i64, tpu.core_type = #tpu.core_type<tc>, window_params = [{transform_indices = @transform_0, window_bounds = array<i64: 8, 128>}, {pipeline_mode = #tpu.pipeline_mode<synchronous>, transform_indices = @transform_1, window_bounds = array<i64: 128, 128>}, {pipeline_mode = #tpu.pipeline_mode<synchronous>, transform_indices = @transform_2, window_bounds = array<i64: 1, 128>}, {pipeline_mode = #tpu.pipeline_mode<synchronous>, transform_indices = @transform_3, window_bounds = array<i64: 128, 256>}, {pipeline_mode = #tpu.pipeline_mode<synchronous>, transform_indices = @transform_4, window_bounds = array<i64: 1, 256>}, {pipeline_mode = #tpu.pipeline_mode<synchronous>, transform_indices = @transform_5, window_bounds = array<i64: 256, 512>}, {pipeline_mode = #tpu.pipeline_mode<synchronous>, transform_indices = @transform_6, window_bounds = array<i64: 1, 512>}, {pipeline_mode = #tpu.pipeline_mode<synchronous>, transform_indices = @transform_7, window_bounds = array<i64: 512, 896>}, {pipeline_mode = #tpu.pipeline_mode<synchronous>, transform_indices = @transform_8, window_bounds = array<i64: 1, 896>}, {transform_indices = @transform_9, window_bounds = array<i64: 8, 896>}]} {
    %c0 = arith.constant 0 : index
    %c0_0 = arith.constant 0 : index
    %0 = vector.load %arg1[%c0, %c0_0] : memref<8x128xbf16, #tpu.memory_space<vmem>>, vector<8x128xbf16>
    %c0_1 = arith.constant 0 : index
    %c0_2 = arith.constant 0 : index
    %1 = vector.load %arg2[%c0_1, %c0_2] : memref<128x128xbf16, #tpu.memory_space<vmem>>, vector<128x128xbf16>
    %cst = arith.constant dense<0.000000e+00> : vector<8x128xf32>
    %2 = tpu.matmul %0, %1, %cst {dimension_numbers = #tpu.dot_dimension_numbers<[1], [0], [0], [1], [0, 0, 1, 1], [], []>} : vector<8x128xbf16>, vector<128x128xbf16>, vector<8x128xf32> -> vector<8x128xf32>
    %c0_3 = arith.constant 0 : index
    %c0_4 = arith.constant 0 : index
    %3 = vector.load %arg3[%c0_3, %c0_4] : memref<1x128xf32, #tpu.memory_space<vmem>>, vector<1x128xf32>
    %4 = vector.broadcast %3 : vector<1x128xf32> to vector<8x128xf32>
    %5 = arith.addf %2, %4 : vector<8x128xf32>
    %cst_5 = arith.constant 0.000000e+00 : f32
    %6 = vector.broadcast %cst_5 : f32 to vector<8x128xf32>
    %7 = arith.cmpf ogt, %5, %6 : vector<8x128xf32>
    %cst_6 = arith.constant 2.000000e-01 : f32
    %8 = vector.broadcast %cst_6 : f32 to vector<8x128xf32>
    %9 = arith.mulf %8, %5 : vector<8x128xf32>
    %10 = arith.select %7, %5, %9 : vector<8x128xi1>, vector<8x128xf32>
    %11 = arith.truncf %10 : vector<8x128xf32> to vector<8x128xbf16>
    %c0_7 = arith.constant 0 : index
    %c0_8 = arith.constant 0 : index
    %12 = vector.load %arg4[%c0_7, %c0_8] : memref<128x256xbf16, #tpu.memory_space<vmem>>, vector<128x256xbf16>
    %cst_9 = arith.constant dense<0.000000e+00> : vector<8x256xf32>
    %13 = tpu.matmul %11, %12, %cst_9 {dimension_numbers = #tpu.dot_dimension_numbers<[1], [0], [0], [1], [0, 0, 1, 1], [], []>} : vector<8x128xbf16>, vector<128x256xbf16>, vector<8x256xf32> -> vector<8x256xf32>
    %c0_10 = arith.constant 0 : index
    %c0_11 = arith.constant 0 : index
    %14 = vector.load %arg5[%c0_10, %c0_11] : memref<1x256xf32, #tpu.memory_space<vmem>>, vector<1x256xf32>
    %15 = vector.broadcast %14 : vector<1x256xf32> to vector<8x256xf32>
    %16 = arith.addf %13, %15 : vector<8x256xf32>
    %cst_12 = arith.constant 0.000000e+00 : f32
    %17 = vector.broadcast %cst_12 : f32 to vector<8x256xf32>
    %18 = arith.cmpf ogt, %16, %17 : vector<8x256xf32>
    %cst_13 = arith.constant 2.000000e-01 : f32
    %19 = vector.broadcast %cst_13 : f32 to vector<8x256xf32>
    %20 = arith.mulf %19, %16 : vector<8x256xf32>
    %21 = arith.select %18, %16, %20 : vector<8x256xi1>, vector<8x256xf32>
    %22 = arith.truncf %21 : vector<8x256xf32> to vector<8x256xbf16>
    %c0_14 = arith.constant 0 : index
    %c0_15 = arith.constant 0 : index
    %23 = vector.load %arg6[%c0_14, %c0_15] : memref<256x512xbf16, #tpu.memory_space<vmem>>, vector<256x512xbf16>
    %cst_16 = arith.constant dense<0.000000e+00> : vector<8x512xf32>
    %24 = tpu.matmul %22, %23, %cst_16 {dimension_numbers = #tpu.dot_dimension_numbers<[1], [0], [0], [1], [0, 0, 1, 1], [], []>} : vector<8x256xbf16>, vector<256x512xbf16>, vector<8x512xf32> -> vector<8x512xf32>
    %c0_17 = arith.constant 0 : index
    %c0_18 = arith.constant 0 : index
    %25 = vector.load %arg7[%c0_17, %c0_18] : memref<1x512xf32, #tpu.memory_space<vmem>>, vector<1x512xf32>
    %26 = vector.broadcast %25 : vector<1x512xf32> to vector<8x512xf32>
    %27 = arith.addf %24, %26 : vector<8x512xf32>
    %cst_19 = arith.constant 0.000000e+00 : f32
    %28 = vector.broadcast %cst_19 : f32 to vector<8x512xf32>
    %29 = arith.cmpf ogt, %27, %28 : vector<8x512xf32>
    %cst_20 = arith.constant 2.000000e-01 : f32
    %30 = vector.broadcast %cst_20 : f32 to vector<8x512xf32>
    %31 = arith.mulf %30, %27 : vector<8x512xf32>
    %32 = arith.select %29, %27, %31 : vector<8x512xi1>, vector<8x512xf32>
    %33 = arith.truncf %32 : vector<8x512xf32> to vector<8x512xbf16>
    %c0_21 = arith.constant 0 : index
    %c0_22 = arith.constant 0 : index
    %34 = vector.load %arg8[%c0_21, %c0_22] : memref<512x896xbf16, #tpu.memory_space<vmem>>, vector<512x896xbf16>
    %cst_23 = arith.constant dense<0.000000e+00> : vector<8x896xf32>
    %35 = tpu.matmul %33, %34, %cst_23 {dimension_numbers = #tpu.dot_dimension_numbers<[1], [0], [0], [1], [0, 0, 1, 1], [], []>} : vector<8x512xbf16>, vector<512x896xbf16>, vector<8x896xf32> -> vector<8x896xf32>
    %c0_24 = arith.constant 0 : index
    %c0_25 = arith.constant 0 : index
    %36 = vector.load %arg9[%c0_24, %c0_25] : memref<1x896xf32, #tpu.memory_space<vmem>>, vector<1x896xf32>
    %37 = vector.broadcast %36 : vector<1x896xf32> to vector<8x896xf32>
    %38 = arith.addf %35, %37 : vector<8x896xf32>
    %39 = math.tanh %38 : vector<8x896xf32>
    %c0_26 = arith.constant 0 : index
    %c0_27 = arith.constant 0 : index
    %40 = vector.load %arg10[%c0_26, %c0_27] : memref<8x896xf32, #tpu.memory_space<vmem>>, vector<8x896xf32>
    tpu.vector_store %arg10[%c0_26, %c0_27], %39 {strides = array<i32>} : memref<8x896xf32, #tpu.memory_space<vmem>>, vector<8x896xf32>,
    return
  }
  func.func @transform_0(%arg0: i32) -> (i32, i32) {
    %c0_i32 = arith.constant 0 : i32
    %c0_i32_0 = arith.constant 0 : i32
    return %arg0, %c0_i32 : i32, i32
  }
  func.func @transform_1(%arg0: i32) -> (i32, i32) {
    %c0_i32 = arith.constant 0 : i32
    %c0_i32_0 = arith.constant 0 : i32
    %c0_i32_1 = arith.constant 0 : i32
    return %c0_i32, %c0_i32_0 : i32, i32
  }
  func.func @transform_2(%arg0: i32) -> (i32, i32) {
    %c0_i32 = arith.constant 0 : i32
    %c0_i32_0 = arith.constant 0 : i32
    %c0_i32_1 = arith.constant 0 : i32
    return %c0_i32, %c0_i32_0 : i32, i32
  }
  func.func @transform_3(%arg0: i32) -> (i32, i32) {
    %c0_i32 = arith.constant 0 : i32
    %c0_i32_0 = arith.constant 0 : i32
    %c0_i32_1 = arith.constant 0 : i32
    return %c0_i32, %c0_i32_0 : i32, i32
  }
  func.func @transform_4(%arg0: i32) -> (i32, i32) {
    %c0_i32 = arith.constant 0 : i32
    %c0_i32_0 = arith.constant 0 : i32
    %c0_i32_1 = arith.constant 0 : i32
    return %c0_i32, %c0_i32_0 : i32, i32
  }
  func.func @transform_5(%arg0: i32) -> (i32, i32) {
    %c0_i32 = arith.constant 0 : i32
    %c0_i32_0 = arith.constant 0 : i32
    %c0_i32_1 = arith.constant 0 : i32
    return %c0_i32, %c0_i32_0 : i32, i32
  }
  func.func @transform_6(%arg0: i32) -> (i32, i32) {
    %c0_i32 = arith.constant 0 : i32
    %c0_i32_0 = arith.constant 0 : i32
    %c0_i32_1 = arith.constant 0 : i32
    return %c0_i32, %c0_i32_0 : i32, i32
  }
  func.func @transform_7(%arg0: i32) -> (i32, i32) {
    %c0_i32 = arith.constant 0 : i32
    %c0_i32_0 = arith.constant 0 : i32
    %c0_i32_1 = arith.constant 0 : i32
    return %c0_i32, %c0_i32_0 : i32, i32
  }
  func.func @transform_8(%arg0: i32) -> (i32, i32) {
    %c0_i32 = arith.constant 0 : i32
    %c0_i32_0 = arith.constant 0 : i32
    %c0_i32_1 = arith.constant 0 : i32
    return %c0_i32, %c0_i32_0 : i32, i32
  }
  func.func @transform_9(%arg0: i32) -> (i32, i32) {
    %c0_i32 = arith.constant 0 : i32
    %c0_i32_0 = arith.constant 0 : i32
    return %arg0, %c0_i32 : i32, i32
  }
}

</mosaic_0001>

<bundles_post_ra>
// kernel: generator_forward.1
= control target key start
LH: loop header
LB: loop body
LE: loop exit
PB: predicated region body
PF: predicated region fallthrough
CT: control target
= control target key end

     0   :  { %s6155_s1 = inlined_call_operand.vmem [shape: bf16[128,128], index: 1, kind: input, shape index: {}]   ;;  %s6156_s3 = inlined_call_operand.vmem [shape: bf16[128,256], index: 3, kind: input, shape index: {}]   ;;  %s6157_s2 = inlined_call_operand.vmem [shape: f32[1,128], index: 2, kind: input, shape index: {}]   ;;  %s6158_s0 = inlined_call_operand.vmem [shape: bf16[8,128], index: 0, kind: input, shape index: {}]   ;;  %s6159_s5 = inlined_call_operand.vmem [shape: bf16[256,512], index: 5, kind: input, shape index: {}]   ;;  %s6160_s4 = inlined_call_operand.vmem [shape: f32[1,256], index: 4, kind: input, shape index: {}]   ;;  %s6161_s7 = inlined_call_operand.vmem [shape: bf16[512,896], index: 7, kind: input, shape index: {}]   ;;  %s6162_s6 = inlined_call_operand.vmem [shape: f32[1,512], index: 6, kind: input, shape index: {}]   ;;  %s6163_s8 = inlined_call_operand.vmem [shape: f32[1,896], index: 8, kind: input, shape index: {}]   ;;  %s6164_s9 = inlined_call_operand.vmem [shape: f32[8,896], index: 9, kind: output, shape index: {}]  }
   0x1   :  { %v3829_v0 = vld [vmem:[%s6155_s1 + $0x38] sm:$0xff]  ;;  %v3828_v1 = vld [vmem:[%s6155_s1 + $0x30] sm:$0xff]  ;;  %v2656_v7 = vld [vmem:[%s6156_s3 + $0x60] sm:$0xf] }
   0x2   :  { %101 = vmatpush.bf16.msra.mxu0 %v3829_v0  ;;  %v2664_v2 = vld [vmem:[%s6156_s3 + $0x70] sm:$0xf]  ;;  %v3845_v3 = vld [vmem:[%s6156_s3 + $0x74] sm:$0xf0]  ;;  %v3844_v4 = vld [vmem:[%s6156_s3 + $0x74] sm:$0xf] }
   0x3   :  { %v2665_v5 = vor.u32 %v3845_v3, %v2664_v2  ;;  %v2666_v6 = vld [vmem:[%s6156_s3 + $0x78] sm:$0xf0]  ;;  %v3843_v8 = vld [vmem:[%s6156_s3 + $0x64] sm:$0xf0]  ;;  %v3842_v10 = vld [vmem:[%s6156_s3 + $0x64] sm:$0xf] }
   0x4   :  { %v2669_v9 = vor.u32 %v3844_v4, %v2666_v6  ;;  %v2658_v11 = vld [vmem:[%s6156_s3 + $0x68] sm:$0xf0]  ;;  %v2657_v13 = vor.u32 %v3843_v8, %v2656_v7  ;;  %v2648_v15 = vld [vmem:[%s6156_s3 + $0x50] sm:$0xf]  ;;  %v3841_v16 = vld [vmem:[%s6156_s3 + $0x54] sm:$0xf0] }
   0x5   :  { %v3827_v12 = vld [vmem:[%s6155_s1 + $0x28] sm:$0xff]  ;;  %220 = vmatpush.bf16.msra.mxu1 %v2665_v5  ;;  %v2661_v14 = vor.u32 %v3842_v10, %v2658_v11  ;;  %v3840_v17 = vld [vmem:[%s6156_s3 + $0x54] sm:$0xf]  ;;  %v2650_v18 = vld [vmem:[%s6156_s3 + $0x58] sm:$0xf0]  ;;  %v2649_v20 = vor.u32 %v3841_v16, %v2648_v15 }
   0x6   :  { %102 = vmatpush.bf16.msra.mxu0 %v3828_v1  ;;  %233 = vmatpush.bf16.msra.mxu2 %v2669_v9  ;;  %v3826_v19 = vld [vmem:[%s6155_s1 + $0x20] sm:$0xff]  ;;  %v2653_v21 = vor.u32 %v3840_v17, %v2650_v18  ;;  %v3839_v23 = vld [vmem:[%s6156_s3 + $0x44] sm:$0xf0]  ;;  %v2642_v25 = vld [vmem:[%s6156_s3 + $0x48] sm:$0xf0] }
   0x7   :  { %v2640_v22 = vld [vmem:[%s6156_s3 + $0x40] sm:$0xf]  ;;  %v3838_v24 = vld [vmem:[%s6156_s3 + $0x44] sm:$0xf]  ;;  %v3825_v26 = vld [vmem:[%s6155_s1 + $0x18] sm:$0xff] }
   0x8   :  { %v2641_v27 = vor.u32 %v3839_v23, %v2640_v22  ;;  %v2645_v28 = vor.u32 %v3838_v24, %v2642_v25  ;;  %v2632_v29 = vld [vmem:[%s6156_s3 + $0x30] sm:$0xf]  ;;  %v3837_v30 = vld [vmem:[%s6156_s3 + $0x34] sm:$0xf0]  ;;  %v3836_v31 = vld [vmem:[%s6156_s3 + $0x34] sm:$0xf] }
   0x9   :  { %221 = vmatpush.bf16.msra.mxu1 %v2657_v13  ;;  %v2634_v32 = vld [vmem:[%s6156_s3 + $0x38] sm:$0xf0]  ;;  %v3824_v33 = vld [vmem:[%s6155_s1 + $0x10] sm:$0xff]  ;;  %v2633_v34 = vor.u32 %v3837_v30, %v2632_v29  ;;  %v2624_v36 = vld [vmem:[%s6156_s3 + $0x20] sm:$0xf] }
   0xa   :  { %103 = vmatpush.bf16.msra.mxu0 %v3827_v12  ;;  %234 = vmatpush.bf16.msra.mxu2 %v2661_v14  ;;  %v2637_v35 = vor.u32 %v3836_v31, %v2634_v32  ;;  %v3835_v37 = vld [vmem:[%s6156_s3 + $0x24] sm:$0xf0]  ;;  %v3834_v38 = vld [vmem:[%s6156_s3 + $0x24] sm:$0xf]  ;;  %v2626_v39 = vld [vmem:[%s6156_s3 + $0x28] sm:$0xf0] }
   0xb   :  { %v3823_v40 = vld [vmem:[%s6155_s1 + $0x8] sm:$0xff]  ;;  %v2625_v41 = vor.u32 %v3835_v37, %v2624_v36  ;;  %v2629_v42 = vor.u32 %v3834_v38, %v2626_v39  ;;  %v3822_v43 = vld [vmem:[%s6155_s1] sm:$0xff]  ;;  %v2616_v45 = vld [vmem:[%s6156_s3 + $0x10] sm:$0xf] }
   0xc   :  { %v32_v44 = vld [vmem:[%s6158_s0] sm:$0xf]  ;;  %v3833_v46 = vld [vmem:[%s6156_s3 + $0x14] sm:$0xf0]  ;;  %v3832_v47 = vld [vmem:[%s6156_s3 + $0x14] sm:$0xf] }
   0xd   :  { %222 = vmatpush.bf16.msra.mxu1 %v2649_v20  ;;  %v2617_v48 = vor.u32 %v3833_v46, %v2616_v45  ;;  %v2618_v49 = vld [vmem:[%s6156_s3 + $0x18] sm:$0xf0]  ;;  %v2608_v51 = vld [vmem:[%s6156_s3] sm:$0xf]  ;;  %v3831_v52 = vld [vmem:[%s6156_s3 + $0x4] sm:$0xf0] }
   0xe   :  { %104 = vmatpush.bf16.msra.mxu0 %v3826_v19  ;;  %235 = vmatpush.bf16.msra.mxu2 %v2653_v21  ;;  %v2621_v50 = vor.u32 %v3832_v47, %v2618_v49  ;;  %v3830_v53 = vld [vmem:[%s6156_s3 + $0x4] sm:$0xf]  ;;  %v2609_v54 = vor.u32 %v3831_v52, %v2608_v51  ;;  %v2610_v55 = vld [vmem:[%s6156_s3 + $0x8] sm:$0xf0]  ;;  %v2784_v57 = vld [vmem:[%s6159_s5 + $0xe0] sm:$0xf] }
   0xf   :  { %v2613_v56 = vor.u32 %v3830_v53, %v2610_v55  ;;  %v3876_v58 = vld [vmem:[%s6159_s5 + $0xec] sm:$0xf0]  ;;  %v3874_v59 = vld [vmem:[%s6159_s5 + $0xe4] sm:$0xf]  ;;  %v2786_v61 = vld [vmem:[%s6159_s5 + $0xf0] sm:$0xf0] }
  0x10   :  { %v2785_v60 = vor.u32 %v3876_v58, %v2784_v57  ;;  %v2768_v62 = vld [vmem:[%s6159_s5 + $0xc0] sm:$0xf]  ;;  %v3872_v63 = vld [vmem:[%s6159_s5 + $0xcc] sm:$0xf0]  ;;  %v2789_v0 = vor.u32 %v3874_v59, %v2786_v61  ;;  %v3870_v1 = vld [vmem:[%s6159_s5 + $0xc4] sm:$0xf] }
  0x11   :  { %223 = vmatpush.bf16.msra.mxu1 %v2641_v27  ;;  %v2770_v2 = vld [vmem:[%s6159_s5 + $0xd0] sm:$0xf0]  ;;  %v2912_v3 = vld [vmem:[%s6159_s5 + $0x1e0] sm:$0xf]  ;;  %v2769_v4 = vor.u32 %v3872_v63, %v2768_v62  ;;  %v3908_v5 = vld [vmem:[%s6159_s5 + $0x1ec] sm:$0xf0] }
  0x12   :  { %105 = vmatpush.bf16.msra.mxu0 %v3825_v26  ;;  %236 = vmatpush.bf16.msra.mxu2 %v2645_v28  ;;  %v3906_v6 = vld [vmem:[%s6159_s5 + $0x1e4] sm:$0xf]  ;;  %v2914_v7 = vld [vmem:[%s6159_s5 + $0x1f0] sm:$0xf0]  ;;  %v2773_v8 = vor.u32 %v3870_v1, %v2770_v2  ;;  %v2913_v9 = vor.u32 %v3908_v5, %v2912_v3  ;;  %v2752_v11 = vld [vmem:[%s6159_s5 + $0xa0] sm:$0xf] }
  0x13   :  { %648 = vmatpush.bf16.msra.mxu3 %v2785_v60  ;;  %v2917_v10 = vor.u32 %v3906_v6, %v2914_v7  ;;  %v3868_v12 = vld [vmem:[%s6159_s5 + $0xac] sm:$0xf0]  ;;  %v3866_v13 = vld [vmem:[%s6159_s5 + $0xa4] sm:$0xf]  ;;  %v2754_v14 = vld [vmem:[%s6159_s5 + $0xb0] sm:$0xf0] }
  0x14   :  { %v2896_v15 = vld [vmem:[%s6159_s5 + $0x1c0] sm:$0xf]  ;;  %v3904_v16 = vld [vmem:[%s6159_s5 + $0x1cc] sm:$0xf0]  ;;  %v3902_v18 = vld [vmem:[%s6159_s5 + $0x1c4] sm:$0xf]  ;;  %v2753_v20 = vor.u32 %v3868_v12, %v2752_v11  ;;  %v2757_v24 = vor.u32 %v3866_v13, %v2754_v14 }
  0x15   :  { %224 = vmatpush.bf16.msra.mxu1 %v2633_v34  ;;  %v2897_v17 = vor.u32 %v3904_v16, %v2896_v15  ;;  %v2898_v19 = vld [vmem:[%s6159_s5 + $0x1d0] sm:$0xf0]  ;;  %v2736_v22 = vld [vmem:[%s6159_s5 + $0x80] sm:$0xf]  ;;  %v3864_v23 = vld [vmem:[%s6159_s5 + $0x8c] sm:$0xf0] }
  0x16   :  { %106 = vmatpush.bf16.msra.mxu0 %v3824_v33  ;;  %237 = vmatpush.bf16.msra.mxu2 %v2637_v35  ;;  %v2901_v21 = vor.u32 %v3902_v18, %v2898_v19  ;;  %v2880_v25 = vld [vmem:[%s6159_s5 + $0x1a0] sm:$0xf]  ;;  %v3900_v26 = vld [vmem:[%s6159_s5 + $0x1ac] sm:$0xf0]  ;;  %v3898_v27 = vld [vmem:[%s6159_s5 + $0x1a4] sm:$0xf]  ;;  %v2737_v34 = vor.u32 %v3864_v23, %v2736_v22 }
  0x17   :  { %649 = vmatpush.bf16.msra.mxu3 %v2769_v4  ;;  %v3862_v28 = vld [vmem:[%s6159_s5 + $0x84] sm:$0xf]  ;;  %v2738_v29 = vld [vmem:[%s6159_s5 + $0x90] sm:$0xf0]  ;;  %v2881_v31 = vor.u32 %v3900_v26, %v2880_v25  ;;  %v2864_v33 = vld [vmem:[%s6159_s5 + $0x180] sm:$0xf] }
  0x18   :  { %v2882_v30 = vld [vmem:[%s6159_s5 + $0x1b0] sm:$0xf0]  ;;  %v3896_v35 = vld [vmem:[%s6159_s5 + $0x18c] sm:$0xf0]  ;;  %v3894_v36 = vld [vmem:[%s6159_s5 + $0x184] sm:$0xf]  ;;  %v2741_v38 = vor.u32 %v3862_v28, %v2738_v29 }
  0x19   :  { %225 = vmatpush.bf16.msra.mxu1 %v2625_v41  ;;  %v2885_v32 = vor.u32 %v3898_v27, %v2882_v30  ;;  %v2866_v37 = vld [vmem:[%s6159_s5 + $0x190] sm:$0xf0]  ;;  %v2720_v39 = vld [vmem:[%s6159_s5 + $0x60] sm:$0xf]  ;;  %v3858_v41 = vld [vmem:[%s6159_s5 + $0x64] sm:$0xf] }
  0x1a   :  { %107 = vmatpush.bf16.msra.mxu0 %v3823_v40  ;;  %238 = vmatpush.bf16.msra.mxu2 %v2629_v42  ;;  %v3860_v40 = vld [vmem:[%s6159_s5 + $0x6c] sm:$0xf0]  ;;  %v2722_v42 = vld [vmem:[%s6159_s5 + $0x70] sm:$0xf0]  ;;  %v2848_v45 = vld [vmem:[%s6159_s5 + $0x160] sm:$0xf] }
  0x1b   :  { %650 = vmatpush.bf16.msra.mxu3 %v2753_v20  ;;  %v2721_v46 = vor.u32 %v3860_v40, %v2720_v39  ;;  %v3892_v47 = vld [vmem:[%s6159_s5 + $0x16c] sm:$0xf0]  ;;  %v2850_v49 = vld [vmem:[%s6159_s5 + $0x170] sm:$0xf0]  ;;  %v2704_v51 = vld [vmem:[%s6159_s5 + $0x40] sm:$0xf] }
  0x1c   :  { %v3856_v52 = vld [vmem:[%s6159_s5 + $0x4c] sm:$0xf0]  ;;  %v3854_v53 = vld [vmem:[%s6159_s5 + $0x44] sm:$0xf]  ;;  %v2849_v55 = vor.u32 %v3892_v47, %v2848_v45  ;;  %v2832_v57 = vld [vmem:[%s6159_s5 + $0x140] sm:$0xf] }
  0x1d   :  { %226 = vmatpush.bf16.msra.mxu1 %v2617_v48  ;;  %v3890_v48 = vld [vmem:[%s6159_s5 + $0x164] sm:$0xf]  ;;  %v2705_v58 = vor.u32 %v3856_v52, %v2704_v51  ;;  %v3888_v59 = vld [vmem:[%s6159_s5 + $0x14c] sm:$0xf0]  ;;  %v2834_v61 = vld [vmem:[%s6159_s5 + $0x150] sm:$0xf0] }
  0x1e   :  { %108 = vmatpush.bf16.msra.mxu0 %v3822_v43  ;;  %239 = vmatpush.bf16.msra.mxu2 %v2621_v50  ;;  %v2865_v43 = vor.u32 %v3896_v35, %v2864_v33  ;;  %v2725_v50 = vor.u32 %v3858_v41, %v2722_v42  ;;  %v3886_v60 = vld [vmem:[%s6159_s5 + $0x144] sm:$0xf]  ;;  %v2688_v63 = vld [vmem:[%s6159_s5 + $0x20] sm:$0xf]  ;;  %v2690_v3 = vld [vmem:[%s6159_s5 + $0x30] sm:$0xf0]  ;;  %v2833_v4 = vor.u32 %v3888_v59, %v2832_v57 }
  0x1f   :  { %651 = vmatpush.bf16.msra.mxu3 %v2737_v34  ;;  %v4134_v1 = vld [vmem:[%s6157_s2] ss:$0 sm:$0xff]  ;;  %v3850_v2 = vld [vmem:[%s6159_s5 + $0x24] sm:$0xf]  ;;  %v2837_v5 = vor.u32 %v3886_v60, %v2834_v61  ;;  %v2818_v11 = vld [vmem:[%s6159_s5 + $0x130] sm:$0xf0] }
  0x20   :  { %v2672_v6 = vld [vmem:[%s6159_s5] sm:$0xf]  ;;  %v2693_v13 = vor.u32 %v3850_v2, %v2690_v3  ;;  %v3848_v14 = vld [vmem:[%s6159_s5 + $0xc] sm:$0xf0]  ;;  %v3846_v15 = vld [vmem:[%s6159_s5 + $0x4] sm:$0xf] }
  0x21   :  { %109 = vmatmul.bf16.vlgmr.msra.gmra.mxu0 %v32_v44  ;;  %227 = vmatpush.bf16.msra.mxu1 %v2609_v54  ;;  %v2869_v44 = vor.u32 %v3894_v36, %v2866_v37  ;;  %v2706_v54 = vld [vmem:[%s6159_s5 + $0x50] sm:$0xf0]  ;;  %v2816_v7 = vld [vmem:[%s6159_s5 + $0x120] sm:$0xf]  ;;  %v2792_v18 = vld [vmem:[%s6159_s5 + $0xe8] sm:$0xf]  ;;  %v2673_v27 = vor.u32 %v3848_v14, %v2672_v6 }
  0x22   :  { %240 = vmatpush.bf16.msra.mxu2 %v2613_v56  ;;  %661 = vmatpush.bf16.msrb.mxu0 %v2913_v9  ;;  %v2853_v56 = vor.u32 %v3890_v48, %v2850_v49  ;;  %v2709_v62 = vor.u32 %v3854_v53, %v2706_v54  ;;  %v3884_v9 = vld [vmem:[%s6159_s5 + $0x12c] sm:$0xf0]  ;;  %v2674_v16 = vld [vmem:[%s6159_s5 + $0x10] sm:$0xf0]  ;;  %v3877_v19 = vld [vmem:[%s6159_s5 + $0xf4] sm:$0xf0] }
  0x23   :  { %652 = vmatpush.bf16.msra.mxu3 %v2721_v46  ;;  %v3875_v20 = vld [vmem:[%s6159_s5 + $0xec] sm:$0xf]  ;;  %v2817_v22 = vor.u32 %v3884_v9, %v2816_v7  ;;  %v3880_v25 = vld [vmem:[%s6159_s5 + $0x10c] sm:$0xf0]  ;;  %v3878_v28 = vld [vmem:[%s6159_s5 + $0x104] sm:$0xf]  ;;  %v2677_v33 = vor.u32 %v3846_v15, %v2674_v16  ;;  %v2793_v34 = vor.u32 %v3877_v19, %v2792_v18 }
  0x24   :  { %v2802_v29 = vld [vmem:[%s6159_s5 + $0x110] sm:$0xf0]  ;;  %v2920_v30 = vld [vmem:[%s6159_s5 + $0x1e8] sm:$0xf]  ;;  %v3907_v35 = vld [vmem:[%s6159_s5 + $0x1ec] sm:$0xf] }
  0x25   :  { %674 = vmatpush.bf16.msrb.mxu1 %v2789_v0  ;;  %v3852_v0 = vld [vmem:[%s6159_s5 + $0x2c] sm:$0xf0]  ;;  %v2922_v36 = vld [vmem:[%s6159_s5 + $0x1f8] sm:$0xf0]  ;;  %v2776_v39 = vld [vmem:[%s6159_s5 + $0xc8] sm:$0xf] }
  0x26   :  { %687 = vmatpush.bf16.msrb.mxu2 %v2917_v10  ;;  %662 = vmatpush.bf16.msrb.mxu0 %v2897_v17  ;;  %v3882_v10 = vld [vmem:[%s6159_s5 + $0x124] sm:$0xf]  ;;  %v3873_v40 = vld [vmem:[%s6159_s5 + $0xd4] sm:$0xf0]  ;;  %v3871_v42 = vld [vmem:[%s6159_s5 + $0xcc] sm:$0xf]  ;;  %v2925_v47 = vor.u32 %v3907_v35, %v2922_v36 }
  0x27   :  { %653 = vmatpush.bf16.msra.mxu3 %v2705_v58  ;;  %v2821_v23 = vor.u32 %v3882_v10, %v2818_v11  ;;  %v2777_v48 = vor.u32 %v3873_v40, %v2776_v39  ;;  %v3869_v51 = vld [vmem:[%s6159_s5 + $0xb4] sm:$0xf0]  ;;  %v3867_v52 = vld [vmem:[%s6159_s5 + $0xac] sm:$0xf]  ;;  %v2762_v54 = vld [vmem:[%s6159_s5 + $0xb8] sm:$0xf0] }
  0x28   :  { %v3905_v57 = vld [vmem:[%s6159_s5 + $0x1d4] sm:$0xf0]  ;;  %v3903_v58 = vld [vmem:[%s6159_s5 + $0x1cc] sm:$0xf]  ;;  %v2906_v60 = vld [vmem:[%s6159_s5 + $0x1d8] sm:$0xf0] }
  0x29   :  { %675 = vmatpush.bf16.msrb.mxu1 %v2773_v8  ;;  %v2689_v8 = vor.u32 %v3852_v0, %v2688_v63  ;;  %v2909_v61 = vor.u32 %v3903_v58, %v2906_v60  ;;  %v3865_v63 = vld [vmem:[%s6159_s5 + $0x94] sm:$0xf0]  ;;  %v3863_v0 = vld [vmem:[%s6159_s5 + $0x8c] sm:$0xf]  ;;  %v2746_v2 = vld [vmem:[%s6159_s5 + $0x98] sm:$0xf0] }
  0x2a   :  { %688 = vmatpush.bf16.msrb.mxu2 %v2901_v21  ;;  %663 = vmatpush.bf16.msrb.mxu0 %v2881_v31  ;;  %v2794_v21 = vld [vmem:[%s6159_s5 + $0xf8] sm:$0xf0]  ;;  %v3909_v31 = vld [vmem:[%s6159_s5 + $0x1f4] sm:$0xf0]  ;;  %v2749_v3 = vor.u32 %v3863_v0, %v2746_v2  ;;  %v3899_v6 = vld [vmem:[%s6159_s5 + $0x1ac] sm:$0xf] }
  0x2b   :  { %654 = vmatpush.bf16.msra.mxu3 %v2689_v8  ;;  %v2921_v45 = vor.u32 %v3909_v31, %v2920_v30  ;;  %v2890_v8 = vld [vmem:[%s6159_s5 + $0x1b8] sm:$0xf0]  ;;  %v2728_v10 = vld [vmem:[%s6159_s5 + $0x68] sm:$0xf]  ;;  %v3861_v11 = vld [vmem:[%s6159_s5 + $0x74] sm:$0xf0] }
  0x2c   :  { %v2893_v9 = vor.u32 %v3899_v6, %v2890_v8  ;;  %v2730_v14 = vld [vmem:[%s6159_s5 + $0x78] sm:$0xf0]  ;;  %v2872_v16 = vld [vmem:[%s6159_s5 + $0x188] sm:$0xf]  ;;  %v3895_v18 = vld [vmem:[%s6159_s5 + $0x18c] sm:$0xf] }
  0x2d   :  { %676 = vmatpush.bf16.msrb.mxu1 %v2757_v24  ;;  %v2800_v24 = vld [vmem:[%s6159_s5 + $0x100] sm:$0xf]  ;;  %v3891_v30 = vld [vmem:[%s6159_s5 + $0x16c] sm:$0xf]  ;;  %v3853_v35 = vld [vmem:[%s6159_s5 + $0x34] sm:$0xf0] }
  0x2e   :  { %689 = vmatpush.bf16.msrb.mxu2 %v2885_v32  ;;  %664 = vmatpush.bf16.msrb.mxu0 %v2865_v43  ;;  %v2801_v41 = vor.u32 %v3880_v25, %v2800_v24  ;;  %v2778_v43 = vld [vmem:[%s6159_s5 + $0xd8] sm:$0xf0]  ;;  %v3855_v24 = vld [vmem:[%s6159_s5 + $0x4c] sm:$0xf]  ;;  %v2840_v39 = vld [vmem:[%s6159_s5 + $0x148] sm:$0xf] }
  0x2f   :  { %655 = vmatpush.bf16.msra.mxu3 %v2673_v27  ;;  %v2781_v49 = vor.u32 %v3871_v42, %v2778_v43  ;;  %v3851_v36 = vld [vmem:[%s6159_s5 + $0x2c] sm:$0xf]  ;;  %v3889_v40 = vld [vmem:[%s6159_s5 + $0x154] sm:$0xf0]  ;;  %v2808_v58 = vld [vmem:[%s6159_s5 + $0x108] sm:$0xf] }
  0x30   :  { %v2841_v42 = vor.u32 %v3889_v40, %v2840_v39  ;;  %v3887_v43 = vld [vmem:[%s6159_s5 + $0x14c] sm:$0xf]  ;;  %v3572_v8 = vld [vmem:[%s6161_s7 + $0x508] sm:$0xf] }
  0x31   :  { %677 = vmatpush.bf16.msrb.mxu1 %v2741_v38  ;;  %v2797_v38 = vor.u32 %v3875_v20, %v2794_v21  ;;  %v2874_v20 = vld [vmem:[%s6159_s5 + $0x198] sm:$0xf0]  ;;  %v3879_v60 = vld [vmem:[%s6159_s5 + $0x10c] sm:$0xf] }
  0x32   :  { %690 = vmatpush.bf16.msrb.mxu2 %v2869_v44  ;;  %665 = vmatpush.bf16.msrb.mxu0 %v2849_v55  ;;  %v2805_v44 = vor.u32 %v3878_v28, %v2802_v29  ;;  %v2765_v55 = vor.u32 %v3867_v52, %v2762_v54  ;;  %v2877_v21 = vor.u32 %v3895_v18, %v2874_v20  ;;  %v2856_v28 = vld [vmem:[%s6159_s5 + $0x168] sm:$0xf]  ;;  %v3893_v29 = vld [vmem:[%s6159_s5 + $0x174] sm:$0xf0]  ;;  %v3883_v54 = vld [vmem:[%s6159_s5 + $0x12c] sm:$0xf] }
  0x33   :  { %700 = vmatpush.bf16.msrb.mxu3 %v2793_v34  ;;  %v2857_v31 = vor.u32 %v3893_v29, %v2856_v28  ;;  %v2696_v34 = vld [vmem:[%s6159_s5 + $0x28] sm:$0xf]  ;;  %v4067_v20 = vld [vmem:[%s6161_s7 + $0x4e8] sm:$0xf0]  ;;  %v3948_v29 = vld [vmem:[%s6161_s7 + $0x130] sm:$0xf0] }
  0x34   :  { %v2824_v52 = vld [vmem:[%s6159_s5 + $0x128] sm:$0xf]  ;;  %v4123_v39 = vld [vmem:[%s6161_s7 + $0x6a8] sm:$0xf0] }
  0x35   :  { %678 = vmatpush.bf16.msrb.mxu1 %v2725_v50  ;;  %v2760_v50 = vld [vmem:[%s6159_s5 + $0xa8] sm:$0xf] }
  0x36   :  { %691 = vmatpush.bf16.msrb.mxu2 %v2853_v56  ;;  %666 = vmatpush.bf16.msrb.mxu0 %v2833_v4  ;;  %v2761_v53 = vor.u32 %v3869_v51, %v2760_v50  ;;  %v2904_v56 = vld [vmem:[%s6159_s5 + $0x1c8] sm:$0xf] }
  0x37   :  { %701 = vmatpush.bf16.msrb.mxu3 %v2777_v48  ;;  %v2905_v59 = vor.u32 %v3905_v57, %v2904_v56  ;;  %v2888_v4 = vld [vmem:[%s6159_s5 + $0x1a8] sm:$0xf]  ;;  %v3847_v48 = vld [vmem:[%s6159_s5 + $0xc] sm:$0xf]  ;;  %v2826_v56 = vld [vmem:[%s6159_s5 + $0x138] sm:$0xf0] }
  0x38   :  { %v2829_v57 = vor.u32 %v3883_v54, %v2826_v56  ;;  %v3012_v54 = vld [vmem:[%s6161_s7 + $0xa8] sm:$0xf]  ;;  %v3934_v56 = vld [vmem:[%s6161_s7 + $0xc0] sm:$0xf0] }
  0x39   :  { %679 = vmatpush.bf16.msrb.mxu1 %v2709_v62  ;;  %v2744_v62 = vld [vmem:[%s6159_s5 + $0x88] sm:$0xf] }
  0x3a   :  { %692 = vmatpush.bf16.msrb.mxu2 %v2837_v5  ;;  %667 = vmatpush.bf16.msrb.mxu0 %v2817_v22  ;;  %v3901_v5 = vld [vmem:[%s6159_s5 + $0x1b4] sm:$0xf0]  ;;  %v2712_v22 = vld [vmem:[%s6159_s5 + $0x48] sm:$0xf] }
  0x3b   :  { %702 = vmatpush.bf16.msrb.mxu3 %v2761_v53  ;;  %v2889_v7 = vor.u32 %v3901_v5, %v2888_v4  ;;  %v3885_v53 = vld [vmem:[%s6159_s5 + $0x134] sm:$0xf0]  ;;  %v3124_v4 = vld [vmem:[%s6161_s7 + $0x188] sm:$0xf]  ;;  %v3962_v5 = vld [vmem:[%s6161_s7 + $0x1a0] sm:$0xf0] }
  0x3d   :  { %680 = vmatpush.bf16.msrb.mxu1 %v2693_v13  ;;  %v2729_v13 = vor.u32 %v3861_v11, %v2728_v10  ;;  %v3125_v10 = vor.u32 %v3962_v5, %v3124_v4  ;;  %v4074_v11 = vld [vmem:[%s6161_s7 + $0x520] sm:$0xf0]  ;;  %v3927_v4 = vld [vmem:[%s6161_s7 + $0x88] sm:$0xf0]  ;;  %v3432_v5 = vld [vmem:[%s6161_s7 + $0x3f0] sm:$0xf] }
  0x3e   :  { %693 = vmatpush.bf16.msrb.mxu2 %v2821_v23  ;;  %668 = vmatpush.bf16.msrb.mxu0 %v2801_v41  ;;  %v3857_v23 = vld [vmem:[%s6159_s5 + $0x54] sm:$0xf0] }
  0x3f   :  { %v2713_v25 = vor.u32 %v3857_v23, %v2712_v22  ;;  %v4018_v22 = vld [vmem:[%s6161_s7 + $0x360] sm:$0xf0]  ;;  %v3796_v23 = vld [vmem:[%s6161_s7 + $0x6c8] sm:$0xf] }
  0x41   :  { %681 = vmatpush.bf16.msrb.mxu1 %v2677_v33 }
  0x42   :  { %694 = vmatpush.bf16.msrb.mxu2 %v2805_v44  ;;  %713 = vmatpush.bf16.msra.mxu0 %v2921_v45  ;;  %v2842_v44 = vld [vmem:[%s6159_s5 + $0x158] sm:$0xf0]  ;;  %v2680_v45 = vld [vmem:[%s6159_s5 + $0x8] sm:$0xf] }
  0x46   :  { %714 = vmatpush.bf16.msra.mxu0 %v2905_v59  ;;  %v3881_v59 = vld [vmem:[%s6159_s5 + $0x114] sm:$0xf0] }
  0x4a   :  { %715 = vmatpush.bf16.msra.mxu0 %v2889_v7 }
  0x9e   :  { %v110_v12 = vpop.f32.mrf.mxu0 }
  0x9f   :  { %v111_v17 = vadd.f32 %v4134_v1, %v110_v12  ;;  %v2745_v1 = vor.u32 %v3865_v63, %v2744_v62  ;;  %v3859_v12 = vld [vmem:[%s6159_s5 + $0x6c] sm:$0xf]  ;;  %v2810_v62 = vld [vmem:[%s6159_s5 + $0x118] sm:$0xf0]  ;;  %v134_v63 = vld [vmem:[%s6160_s4] sm:$0x3] }
  0xa0   :  { %v2733_v15 = vor.u32 %v3859_v12, %v2730_v14  ;;  %v2813_v0 = vor.u32 %v3879_v60, %v2810_v62  ;;  %v137_v7 = vperm.slane %v134_v63, 1  ;;  %v3096_v14 = vld [vmem:[%s6161_s7 + $0x150] sm:$0xf]  ;;  %v3264_v60 = vld [vmem:[%s6161_s7 + $0x2a0] sm:$0xf] }
  0xa1   :  { %v115_v26 = vmul.f32 0.2, %v111_v17  ;;  %vm114_vm0 = vcmp.gt.f32.partialorder %v111_v17, 0.0  ;;  %703 = vmatpush.bf16.msrb.mxu3 %v2745_v1  ;;  %v136_v1 = vperm.slane %v134_v63, 0  ;;  %v3997_v62 = vld [vmem:[%s6161_s7 + $0x2b8] sm:$0xf0] }
  0xa2   :  { %v3712_v63 = vld [vmem:[%s6161_s7 + $0x620] sm:$0xf] }
  0xa3   :  { %v116_v32 = vsel %vm114_vm0, %v111_v17, %v115_v26  ;;  %v3897_v17 = vld [vmem:[%s6159_s5 + $0x194] sm:$0xf0]  ;;  %v2714_v26 = vld [vmem:[%s6159_s5 + $0x58] sm:$0xf0] }
  0xa4   :  { %v117_v37 = vpack.c.bf16 %v116_v32, %v116_v32  ;;  %v2873_v19 = vor.u32 %v3897_v17, %v2872_v16  ;;  %v2717_v27 = vor.u32 %v3855_v24, %v2714_v26  ;;  %v2858_v32 = vld [vmem:[%s6159_s5 + $0x178] sm:$0xf0]  ;;  %v3573_v16 = vor.u32 %v4074_v11, %v3572_v8  ;;  %v3544_v17 = vld [vmem:[%s6161_s7 + $0x4d0] sm:$0xf]  ;;  %v4130_v24 = vld [vmem:[%s6161_s7 + $0x6e0] sm:$0xf0] }
  0xa5   :  { %704 = vmatpush.bf16.msrb.mxu3 %v2729_v13  ;;  %v2861_v33 = vor.u32 %v3891_v30, %v2858_v32  ;;  %v3545_v28 = vor.u32 %v4067_v20, %v3544_v17  ;;  %v3516_v30 = vld [vmem:[%s6161_s7 + $0x498] sm:$0xf]  ;;  %v3236_v8 = vld [vmem:[%s6161_s7 + $0x268] sm:$0xf]  ;;  %v3208_v20 = vld [vmem:[%s6161_s7 + $0x230] sm:$0xf] }
  0xa6   :  { %v112_v46 = vpop.f32.mrf.mxu0  ;;  %228 = vmatmul.bf16.vlgmr.msra.gmra.mxu1 %v117_v37  ;;  %241 = vmatmul.bf16.vlgmr.msra.gmra.mxu2 %v117_v37  ;;  %v2697_v37 = vor.u32 %v3853_v35, %v2696_v34  ;;  %v3320_v34 = vld [vmem:[%s6161_s7 + $0x310] sm:$0xf]  ;;  %v3797_v35 = vor.u32 %v4130_v24, %v3796_v23  ;;  %v3684_v11 = vld [vmem:[%s6161_s7 + $0x5e8] sm:$0xf]  ;;  %v3404_v17 = vld [vmem:[%s6161_s7 + $0x3b8] sm:$0xf] }
  0xa7   :  { %726 = vmatpush.bf16.msra.mxu1 %v2797_v38  ;;  %739 = vmatpush.bf16.msra.mxu2 %v2925_v47  ;;  %v2698_v38 = vld [vmem:[%s6159_s5 + $0x38] sm:$0xf0]  ;;  %v2845_v46 = vor.u32 %v3887_v43, %v2842_v44  ;;  %v3849_v47 = vld [vmem:[%s6159_s5 + $0x14] sm:$0xf0]  ;;  %v3656_v23 = vld [vmem:[%s6161_s7 + $0x5b0] sm:$0xf] }
  0xa8   :  { %716 = vmatpush.bf16.msra.mxu0 %v2873_v19  ;;  %v2701_v41 = vor.u32 %v3851_v36, %v2698_v38  ;;  %v2681_v50 = vor.u32 %v3849_v47, %v2680_v45  ;;  %v3348_v19 = vld [vmem:[%s6161_s7 + $0x348] sm:$0xf]  ;;  %v3768_v38 = vld [vmem:[%s6161_s7 + $0x690] sm:$0xf]  ;;  %v3941_v44 = vld [vmem:[%s6161_s7 + $0xf8] sm:$0xf0] }
  0xa9   :  { %705 = vmatpush.bf16.msrb.mxu3 %v2713_v25  ;;  %v3488_v45 = vld [vmem:[%s6161_s7 + $0x460] sm:$0xf]  ;;  %v4095_v24 = vld [vmem:[%s6161_s7 + $0x5c8] sm:$0xf0] }
  0xab   :  { %727 = vmatpush.bf16.msra.mxu1 %v2781_v49  ;;  %740 = vmatpush.bf16.msra.mxu2 %v2909_v61  ;;  %v2682_v49 = vld [vmem:[%s6159_s5 + $0x18] sm:$0xf0]  ;;  %v2809_v61 = vor.u32 %v3881_v59, %v2808_v58  ;;  %v4046_v58 = vld [vmem:[%s6161_s7 + $0x440] sm:$0xf0] }
  0xac   :  { %717 = vmatpush.bf16.msra.mxu0 %v2857_v31  ;;  %v2685_v51 = vor.u32 %v3847_v48, %v2682_v49  ;;  %v4060_v31 = vld [vmem:[%s6161_s7 + $0x4b0] sm:$0xf0]  ;;  %v3292_v48 = vld [vmem:[%s6161_s7 + $0x2d8] sm:$0xf]  ;;  %v3769_v49 = vor.u32 %v4123_v39, %v3768_v38  ;;  %v3098_v39 = vld [vmem:[%s6161_s7 + $0x16c] sm:$0xf0] }
  0xad   :  { %706 = vmatpush.bf16.msrb.mxu3 %v2697_v37  ;;  %v4011_v37 = vld [vmem:[%s6161_s7 + $0x328] sm:$0xf0]  ;;  %v3952_v38 = vld [vmem:[%s6161_s7 + $0x154] sm:$0xf] }
  0xae   :  { %v3321_v47 = vor.u32 %v4011_v37, %v3320_v34  ;;  %v3976_v34 = vld [vmem:[%s6161_s7 + $0x210] sm:$0xf0] }
  0xaf   :  { %728 = vmatpush.bf16.msra.mxu1 %v2765_v55  ;;  %741 = vmatpush.bf16.msra.mxu2 %v2893_v9  ;;  %v2825_v55 = vor.u32 %v3885_v53, %v2824_v52  ;;  %v4116_v52 = vld [vmem:[%s6161_s7 + $0x670] sm:$0xf0] }
  0xb0   :  { %718 = vmatpush.bf16.msra.mxu0 %v2841_v42  ;;  %v3517_v42 = vor.u32 %v4060_v31, %v3516_v30  ;;  %v3959_v30 = vld [vmem:[%s6161_s7 + $0x18c] sm:$0xf]  ;;  %v3126_v31 = vld [vmem:[%s6161_s7 + $0x1a4] sm:$0xf0] }
  0xb1   :  { %707 = vmatpush.bf16.msrb.mxu3 %v2681_v50  ;;  %v4004_v50 = vld [vmem:[%s6161_s7 + $0x2f0] sm:$0xf0] }
  0xb2   :  { %v3293_v59 = vor.u32 %v4004_v50, %v3292_v48  ;;  %v3322_v50 = vld [vmem:[%s6161_s7 + $0x32c] sm:$0xf0] }
  0xb3   :  { %729 = vmatpush.bf16.msra.mxu1 %v2749_v3  ;;  %742 = vmatpush.bf16.msra.mxu2 %v2877_v21 }
  0xb4   :  { %719 = vmatpush.bf16.msra.mxu0 %v2825_v55 }
  0xb7   :  { %730 = vmatpush.bf16.msra.mxu1 %v2733_v15  ;;  %743 = vmatpush.bf16.msra.mxu2 %v2861_v33  ;;  %v3955_v15 = vld [vmem:[%s6161_s7 + $0x168] sm:$0xf0]  ;;  %v3349_v33 = vor.u32 %v4018_v22, %v3348_v19 }
  0xb8   :  { %720 = vmatpush.bf16.msra.mxu0 %v2809_v61  ;;  %v3097_v26 = vor.u32 %v3955_v15, %v3096_v14  ;;  %v2956_v15 = vld [vmem:[%s6161_s7 + $0x38] sm:$0xf]  ;;  %v3983_v22 = vld [vmem:[%s6161_s7 + $0x248] sm:$0xf0] }
  0xbb   :  { %731 = vmatpush.bf16.msra.mxu1 %v2717_v27  ;;  %744 = vmatpush.bf16.msra.mxu2 %v2845_v46  ;;  %v3068_v27 = vld [vmem:[%s6161_s7 + $0x118] sm:$0xf]  ;;  %v4053_v46 = vld [vmem:[%s6161_s7 + $0x478] sm:$0xf0] }
  0xbc   :  { %v3069_v40 = vor.u32 %v3948_v29, %v3068_v27  ;;  %v3489_v55 = vor.u32 %v4053_v46, %v3488_v45  ;;  %v2928_v27 = vld [vmem:[%s6161_s7] sm:$0xf]  ;;  %v3209_v29 = vor.u32 %v3983_v22, %v3208_v20  ;;  %v3945_v46 = vld [vmem:[%s6161_s7 + $0x11c] sm:$0xf]  ;;  %v4127_v22 = vld [vmem:[%s6161_s7 + $0x6cc] sm:$0xf] }
  0xbf   :  { %732 = vmatpush.bf16.msra.mxu1 %v2701_v41  ;;  %745 = vmatpush.bf16.msra.mxu2 %v2829_v57  ;;  %v3040_v41 = vld [vmem:[%s6161_s7 + $0xe0] sm:$0xf]  ;;  %v3460_v57 = vld [vmem:[%s6161_s7 + $0x428] sm:$0xf] }
  0xc0   :  { %v3041_v53 = vor.u32 %v3941_v44, %v3040_v41  ;;  %v3969_v41 = vld [vmem:[%s6161_s7 + $0x1d8] sm:$0xf0]  ;;  %v3101_v44 = vor.u32 %v3952_v38, %v3098_v39  ;;  %v2930_v38 = vld [vmem:[%s6161_s7 + $0x1c] sm:$0xf0] }
  0xc1   :  { %v3973_v39 = vld [vmem:[%s6161_s7 + $0x1fc] sm:$0xf] }
  0xc3   :  { %733 = vmatpush.bf16.msra.mxu1 %v2685_v51  ;;  %746 = vmatpush.bf16.msra.mxu2 %v2813_v0  ;;  %v3740_v51 = vld [vmem:[%s6161_s7 + $0x658] sm:$0xf]  ;;  %v4109_v0 = vld [vmem:[%s6161_s7 + $0x638] sm:$0xf0] }
  0xc4   :  { %v3741_v61 = vor.u32 %v4116_v52, %v3740_v51  ;;  %v3938_v52 = vld [vmem:[%s6161_s7 + $0xe4] sm:$0xf] }
 0x123   :  { %v229_v2 = vpop.f32.mrf.mxu1 }
 0x124   :  { %v230_v3 = vadd.f32 %v229_v2, %v136_v1  ;;  %v3013_v1 = vor.u32 %v3934_v56, %v3012_v54  ;;  %v2984_v2 = vld [vmem:[%s6161_s7 + $0x70] sm:$0xf]  ;;  %v3294_v56 = vld [vmem:[%s6161_s7 + $0x2f4] sm:$0xf0] }
 0x125   :  { %v2985_v14 = vor.u32 %v3927_v4, %v2984_v2  ;;  %v3994_v4 = vld [vmem:[%s6161_s7 + $0x2a4] sm:$0xf] }
 0x126   :  { %vm246_vm1 = vcmp.gt.f32.partialorder %v230_v3, 0.0  ;;  %v248_v6 = vmul.f32 0.2, %v230_v3 }
 0x128   :  { %v250_v9 = vsel %vm246_vm1, %v230_v3, %v248_v6  ;;  %v3461_v3 = vor.u32 %v4046_v58, %v3460_v57  ;;  %v4039_v6 = vld [vmem:[%s6161_s7 + $0x408] sm:$0xf0] }
 0x129   :  { %v4724_v12 = vpack.c.bf16 %v250_v9, %v250_v9  ;;  %v242_v13 = vpop.f32.mrf.mxu2  ;;  %v3713_v9 = vor.u32 %v4109_v0, %v3712_v63  ;;  %v4088_v63 = vld [vmem:[%s6161_s7 + $0x590] sm:$0xf0]  ;;  %v3931_v0 = vld [vmem:[%s6161_s7 + $0xac] sm:$0xf] }
 0x12a   :  { %v243_v18 = vadd.f32 %v242_v13, %v137_v7  ;;  %v3265_v7 = vor.u32 %v3997_v62, %v3264_v60  ;;  %v4102_v13 = vld [vmem:[%s6161_s7 + $0x600] sm:$0xf0]  ;;  %v4025_v60 = vld [vmem:[%s6161_s7 + $0x398] sm:$0xf0] }
 0x12b   :  { %v231_v21 = vpop.f32.mrf.mxu1  ;;  %656 = vmatmul.bf16.vlgmr.msra.gmra.mxu3 %v4724_v12  ;;  %682 = vmatmul.bf16.vlgmr.msrb.gmra.mxu1 %v4724_v12 }
 0x12c   :  { %vm247_vm2 = vcmp.gt.f32.partialorder %v243_v18, 0.0  ;;  %v249_v25 = vmul.f32 0.2, %v243_v18  ;;  %2192 = vmatpush.bf16.msra.mxu3 %v3125_v10  ;;  %2218 = vmatpush.bf16.msrb.mxu1 %v3573_v16  ;;  %v3990_v10 = vld [vmem:[%s6161_s7 + $0x280] sm:$0xf0]  ;;  %v3685_v21 = vor.u32 %v4102_v13, %v3684_v11 }
 0x12d   :  { %v3920_v16 = vld [vmem:[%s6161_s7 + $0x50] sm:$0xf0]  ;;  %v3237_v19 = vor.u32 %v3990_v10, %v3236_v8  ;;  %v3574_v8 = vld [vmem:[%s6161_s7 + $0x524] sm:$0xf0]  ;;  %v3600_v10 = vld [vmem:[%s6161_s7 + $0x540] sm:$0xf] }
 0x12e   :  { %v251_v32 = vsel %vm247_vm2, %v243_v18, %v249_v25  ;;  %v4032_v18 = vld [vmem:[%s6161_s7 + $0x3d0] sm:$0xf0]  ;;  %v2957_v25 = vor.u32 %v3920_v16, %v2956_v15  ;;  %v4081_v11 = vld [vmem:[%s6161_s7 + $0x558] sm:$0xf0]  ;;  %v2986_v15 = vld [vmem:[%s6161_s7 + $0x8c] sm:$0xf0] }
 0x12f   :  { %v4767_v36 = vpack.c.bf16 %v251_v32, %v251_v32  ;;  %v3657_v32 = vor.u32 %v4095_v24, %v3656_v23  ;;  %v3601_v13 = vor.u32 %v4081_v11, %v3600_v10  ;;  %v3798_v23 = vld [vmem:[%s6161_s7 + $0x6e4] sm:$0xf0]  ;;  %v3630_v10 = vld [vmem:[%s6161_s7 + $0x594] sm:$0xf0] }
 0x130   :  { %2193 = vmatpush.bf16.msra.mxu3 %v3097_v26  ;;  %2219 = vmatpush.bf16.msrb.mxu1 %v3545_v28  ;;  %v3405_v26 = vor.u32 %v4032_v18, %v3404_v17  ;;  %v3913_v28 = vld [vmem:[%s6161_s7 + $0x18] sm:$0xf0]  ;;  %v3238_v17 = vld [vmem:[%s6161_s7 + $0x284] sm:$0xf0]  ;;  %v4064_v18 = vld [vmem:[%s6161_s7 + $0x4d4] sm:$0xf]  ;;  %v3801_v24 = vor.u32 %v4127_v22, %v3798_v23 }
 0x131   :  { %v244_v43 = vpop.f32.mrf.mxu2  ;;  %669 = vmatmul.bf16.vlgmr.msrb.gmra.mxu0 %v4767_v36  ;;  %695 = vmatmul.bf16.vlgmr.msrb.gmra.mxu2 %v4767_v36 }
 0x132   :  { %2205 = vmatpush.bf16.msrb.mxu0 %v3349_v33  ;;  %2231 = vmatpush.bf16.msrb.mxu2 %v3797_v35  ;;  %v3180_v33 = vld [vmem:[%s6161_s7 + $0x1f8] sm:$0xf]  ;;  %v2929_v35 = vor.u32 %v3913_v28, %v2928_v27  ;;  %v3350_v43 = vld [vmem:[%s6161_s7 + $0x364] sm:$0xf0]  ;;  %v3980_v27 = vld [vmem:[%s6161_s7 + $0x234] sm:$0xf] }
 0x133   :  { %v3181_v37 = vor.u32 %v3976_v34, %v3180_v33  ;;  %v4120_v34 = vld [vmem:[%s6161_s7 + $0x694] sm:$0xf] }
 0x134   :  { %2194 = vmatpush.bf16.msra.mxu3 %v3069_v40  ;;  %2220 = vmatpush.bf16.msrb.mxu1 %v3517_v42  ;;  %v3152_v40 = vld [vmem:[%s6161_s7 + $0x1c0] sm:$0xf]  ;;  %v4015_v42 = vld [vmem:[%s6161_s7 + $0x34c] sm:$0xf] }
 0x135   :  { %v3153_v45 = vor.u32 %v3969_v41, %v3152_v40  ;;  %v3353_v48 = vor.u32 %v4015_v42, %v3350_v43  ;;  %v3182_v41 = vld [vmem:[%s6161_s7 + $0x214] sm:$0xf0]  ;;  %v4050_v42 = vld [vmem:[%s6161_s7 + $0x464] sm:$0xf]  ;;  %v3490_v43 = vld [vmem:[%s6161_s7 + $0x47c] sm:$0xf0] }
 0x136   :  { %2206 = vmatpush.bf16.msrb.mxu0 %v3321_v47  ;;  %2232 = vmatpush.bf16.msrb.mxu2 %v3769_v49  ;;  %v3070_v47 = vld [vmem:[%s6161_s7 + $0x134] sm:$0xf0]  ;;  %v4008_v49 = vld [vmem:[%s6161_s7 + $0x314] sm:$0xf] }
 0x137   :  { %v3073_v51 = vor.u32 %v3945_v46, %v3070_v47  ;;  %v3325_v54 = vor.u32 %v4008_v49, %v3322_v50  ;;  %v4113_v46 = vld [vmem:[%s6161_s7 + $0x65c] sm:$0xf]  ;;  %v3742_v47 = vld [vmem:[%s6161_s7 + $0x674] sm:$0xf0]  ;;  %v3966_v49 = vld [vmem:[%s6161_s7 + $0x1c4] sm:$0xf] }
 0x138   :  { %2195 = vmatpush.bf16.msra.mxu3 %v3041_v53  ;;  %2221 = vmatpush.bf16.msrb.mxu1 %v3489_v55  ;;  %v3042_v53 = vld [vmem:[%s6161_s7 + $0xfc] sm:$0xf0]  ;;  %v4001_v55 = vld [vmem:[%s6161_s7 + $0x2dc] sm:$0xf] }
 0x139   :  { %v3045_v57 = vor.u32 %v3938_v52, %v3042_v53  ;;  %v3297_v58 = vor.u32 %v4001_v55, %v3294_v56  ;;  %v3154_v50 = vld [vmem:[%s6161_s7 + $0x1dc] sm:$0xf0]  ;;  %v3462_v53 = vld [vmem:[%s6161_s7 + $0x444] sm:$0xf0] }
 0x13a   :  { %2207 = vmatpush.bf16.msrb.mxu0 %v3293_v59  ;;  %2233 = vmatpush.bf16.msrb.mxu2 %v3741_v61  ;;  %v3376_v59 = vld [vmem:[%s6161_s7 + $0x380] sm:$0xf]  ;;  %v3628_v61 = vld [vmem:[%s6161_s7 + $0x578] sm:$0xf]  ;;  %v3157_v52 = vor.u32 %v3966_v49, %v3154_v50 }
 0x13b   :  { %708 = vmatmul.bf16.vlgmr.msrb.gmra.mxu3 %v4724_v12  ;;  %734 = vmatmul.bf16.vlgmr.msra.gmra.mxu1 %v4724_v12  ;;  %v3433_v12 = vor.u32 %v4039_v6, %v3432_v5  ;;  %v3377_v62 = vor.u32 %v4025_v60, %v3376_v59  ;;  %v3629_v2 = vor.u32 %v4088_v63, %v3628_v61  ;;  %v3266_v5 = vld [vmem:[%s6161_s7 + $0x2bc] sm:$0xf0]  ;;  %v4071_v6 = vld [vmem:[%s6161_s7 + $0x50c] sm:$0xf]  ;;  %v3434_v59 = vld [vmem:[%s6161_s7 + $0x40c] sm:$0xf0] }
 0x13c   :  { %2196 = vmatpush.bf16.msra.mxu3 %v3013_v1  ;;  %2222 = vmatpush.bf16.msrb.mxu1 %v3461_v3  ;;  %v3014_v1 = vld [vmem:[%s6161_s7 + $0xc4] sm:$0xf0]  ;;  %v3714_v55 = vld [vmem:[%s6161_s7 + $0x63c] sm:$0xf0]  ;;  %v4099_v61 = vld [vmem:[%s6161_s7 + $0x5ec] sm:$0xf] }
 0x13d   :  { %v3017_v3 = vor.u32 %v3931_v0, %v3014_v1  ;;  %v4029_v0 = vld [vmem:[%s6161_s7 + $0x3bc] sm:$0xf]  ;;  %v3406_v1 = vld [vmem:[%s6161_s7 + $0x3d4] sm:$0xf0] }
 0x13e   :  { %2208 = vmatpush.bf16.msrb.mxu0 %v3265_v7  ;;  %2234 = vmatpush.bf16.msrb.mxu2 %v3713_v9  ;;  %v3269_v7 = vor.u32 %v3994_v4, %v3266_v5  ;;  %v3577_v9 = vor.u32 %v4071_v6, %v3574_v8  ;;  %v3658_v4 = vld [vmem:[%s6161_s7 + $0x5cc] sm:$0xf0]  ;;  %v4022_v6 = vld [vmem:[%s6161_s7 + $0x384] sm:$0xf]  ;;  %v4085_v8 = vld [vmem:[%s6161_s7 + $0x57c] sm:$0xf] }
 0x13f   :  { %v3633_v11 = vor.u32 %v4085_v8, %v3630_v10  ;;  %v4075_v8 = vld [vmem:[%s6161_s7 + $0x528] sm:$0xf0] }
 0x140   :  { %2197 = vmatpush.bf16.msra.mxu3 %v2985_v14  ;;  %2223 = vmatpush.bf16.msrb.mxu1 %v3433_v12  ;;  %v3924_v14 = vld [vmem:[%s6161_s7 + $0x74] sm:$0xf]  ;;  %v3987_v12 = vld [vmem:[%s6161_s7 + $0x26c] sm:$0xf] }
 0x141   :  { %721 = vmatmul.bf16.vlgmr.msra.gmra.mxu0 %v4767_v36  ;;  %747 = vmatmul.bf16.vlgmr.msra.gmra.mxu2 %v4767_v36  ;;  %v3129_v36 = vor.u32 %v3959_v30, %v3126_v31  ;;  %v2989_v16 = vor.u32 %v3924_v14, %v2986_v15  ;;  %v3241_v20 = vor.u32 %v3987_v12, %v3238_v17  ;;  %v4057_v30 = vld [vmem:[%s6161_s7 + $0x49c] sm:$0xf]  ;;  %v3518_v31 = vld [vmem:[%s6161_s7 + $0x4b4] sm:$0xf0]  ;;  %v5105_v14 = vld [vmem:[%s6162_s6] sm:$0xf] }
 0x142   :  { %2209 = vmatpush.bf16.msrb.mxu0 %v3237_v19  ;;  %2235 = vmatpush.bf16.msrb.mxu2 %v3685_v21  ;;  %v3546_v19 = vld [vmem:[%s6161_s7 + $0x4ec] sm:$0xf0]  ;;  %v3521_v33 = vor.u32 %v4057_v30, %v3518_v31  ;;  %v4078_v15 = vld [vmem:[%s6161_s7 + $0x544] sm:$0xf]  ;;  %v3602_v12 = vld [vmem:[%s6161_s7 + $0x55c] sm:$0xf0] }
 0x143   :  { %v3549_v21 = vor.u32 %v4064_v18, %v3546_v19  ;;  %v3605_v17 = vor.u32 %v4078_v15, %v3602_v12  ;;  %v322_v49 = vperm.slane %v5105_v14, 2  ;;  %v3928_v12 = vld [vmem:[%s6161_s7 + $0x90] sm:$0xf0] }
 0x144   :  { %2198 = vmatpush.bf16.msra.mxu3 %v2957_v25  ;;  %2224 = vmatpush.bf16.msrb.mxu1 %v3405_v26  ;;  %v3917_v25 = vld [vmem:[%s6161_s7 + $0x3c] sm:$0xf]  ;;  %v2958_v26 = vld [vmem:[%s6161_s7 + $0x54] sm:$0xf0] }
 0x145   :  { %v2961_v28 = vor.u32 %v3917_v25, %v2958_v26  ;;  %v3963_v25 = vld [vmem:[%s6161_s7 + $0x1a8] sm:$0xf0] }
 0x146   :  { %2210 = vmatpush.bf16.msrb.mxu0 %v3209_v29  ;;  %2236 = vmatpush.bf16.msrb.mxu2 %v3657_v32  ;;  %v3210_v29 = vld [vmem:[%s6161_s7 + $0x24c] sm:$0xf0] }
 0x147   :  { %v3213_v32 = vor.u32 %v3980_v27, %v3210_v29 }
 0x148   :  { %2199 = vmatpush.bf16.msra.mxu3 %v2929_v35  ;;  %2225 = vmatpush.bf16.msrb.mxu1 %v3377_v62  ;;  %v3770_v35 = vld [vmem:[%s6161_s7 + $0x6ac] sm:$0xf0]  ;;  %v3686_v62 = vld [vmem:[%s6161_s7 + $0x604] sm:$0xf0] }
 0x149   :  { %v3689_v63 = vor.u32 %v4099_v61, %v3686_v62 }
 0x14a   :  { %2211 = vmatpush.bf16.msrb.mxu0 %v3181_v37  ;;  %2237 = vmatpush.bf16.msrb.mxu2 %v3629_v2  ;;  %v3910_v37 = vld [vmem:[%s6161_s7 + $0x4] sm:$0xf]  ;;  %v4092_v2 = vld [vmem:[%s6161_s7 + $0x5b4] sm:$0xf] }
 0x14b   :  { %v2933_v40 = vor.u32 %v3910_v37, %v2930_v38  ;;  %v3661_v5 = vor.u32 %v4092_v2, %v3658_v4  ;;  %v3356_v37 = vld [vmem:[%s6161_s7 + $0x350] sm:$0xf]  ;;  %v4019_v38 = vld [vmem:[%s6161_s7 + $0x368] sm:$0xf0]  ;;  %v3998_v4 = vld [vmem:[%s6161_s7 + $0x2c0] sm:$0xf0] }
 0x14c   :  { %2244 = vmatpush.bf16.msrb.mxu3 %v3129_v36  ;;  %2270 = vmatpush.bf16.msra.mxu1 %v3577_v9  ;;  %v3773_v36 = vor.u32 %v4120_v34, %v3770_v35  ;;  %v3935_v2 = vld [vmem:[%s6161_s7 + $0xc8] sm:$0xf0] }
 0x14e   :  { %2212 = vmatpush.bf16.msrb.mxu0 %v3153_v45  ;;  %2238 = vmatpush.bf16.msrb.mxu2 %v3601_v13  ;;  %v3493_v45 = vor.u32 %v4050_v42, %v3490_v43  ;;  %v3357_v43 = vor.u32 %v4019_v38, %v3356_v37  ;;  %v3984_v37 = vld [vmem:[%s6161_s7 + $0x250] sm:$0xf0]  ;;  %v3524_v38 = vld [vmem:[%s6161_s7 + $0x4a0] sm:$0xf] }
 0x150   :  { %2245 = vmatpush.bf16.msrb.mxu3 %v3101_v44  ;;  %2271 = vmatpush.bf16.msra.mxu1 %v3549_v21  ;;  %v3185_v44 = vor.u32 %v3973_v39, %v3182_v41 }
 0x152   :  { %2257 = vmatpush.bf16.msra.mxu0 %v3353_v48  ;;  %2283 = vmatpush.bf16.msra.mxu2 %v3801_v24  ;;  %v3745_v48 = vor.u32 %v4113_v46, %v3742_v47  ;;  %v3132_v24 = vld [vmem:[%s6161_s7 + $0x190] sm:$0xf]  ;;  %v3949_v46 = vld [vmem:[%s6161_s7 + $0x138] sm:$0xf0]  ;;  %v3328_v47 = vld [vmem:[%s6161_s7 + $0x318] sm:$0xf] }
 0x153   :  { %v3133_v31 = vor.u32 %v3963_v25, %v3132_v24  ;;  %v3804_v24 = vld [vmem:[%s6161_s7 + $0x6d0] sm:$0xf] }
 0x154   :  { %2246 = vmatpush.bf16.msrb.mxu3 %v3073_v51  ;;  %2272 = vmatpush.bf16.msra.mxu1 %v3521_v33  ;;  %v4043_v51 = vld [vmem:[%s6161_s7 + $0x42c] sm:$0xf] }
 0x155   :  { %v3465_v56 = vor.u32 %v4043_v51, %v3462_v53  ;;  %v3048_v53 = vld [vmem:[%s6161_s7 + $0xe8] sm:$0xf] }
 0x156   :  { %2258 = vmatpush.bf16.msra.mxu0 %v3325_v54  ;;  %2284 = vmatpush.bf16.msra.mxu2 %v3773_v36  ;;  %v4106_v54 = vld [vmem:[%s6161_s7 + $0x624] sm:$0xf]  ;;  %v3956_v36 = vld [vmem:[%s6161_s7 + $0x170] sm:$0xf0] }
 0x158   :  { %2247 = vmatpush.bf16.msrb.mxu3 %v3045_v57  ;;  %2273 = vmatpush.bf16.msra.mxu1 %v3493_v45  ;;  %v3717_v57 = vor.u32 %v4106_v54, %v3714_v55 }
 0x15a   :  { %2259 = vmatpush.bf16.msra.mxu0 %v3297_v58  ;;  %2285 = vmatpush.bf16.msra.mxu2 %v3745_v48  ;;  %v4036_v58 = vld [vmem:[%s6161_s7 + $0x3f4] sm:$0xf] }
 0x15b   :  { %v3437_v60 = vor.u32 %v4036_v58, %v3434_v59  ;;  %v4012_v48 = vld [vmem:[%s6161_s7 + $0x330] sm:$0xf0]  ;;  %v4005_v58 = vld [vmem:[%s6161_s7 + $0x2f8] sm:$0xf0]  ;;  %v323_v59 = vperm.slane %v5105_v14, 3 }
 0x15c   :  { %2248 = vmatpush.bf16.msrb.mxu3 %v3017_v3  ;;  %2274 = vmatpush.bf16.msra.mxu1 %v3465_v56  ;;  %v3409_v3 = vor.u32 %v4029_v0, %v3406_v1  ;;  %v3942_v56 = vld [vmem:[%s6161_s7 + $0x100] sm:$0xf0]  ;;  %v3020_v1 = vld [vmem:[%s6161_s7 + $0xb0] sm:$0xf] }
 0x15d   :  { %v3021_v10 = vor.u32 %v3935_v2, %v3020_v1  ;;  %v4047_v1 = vld [vmem:[%s6161_s7 + $0x448] sm:$0xf0] }
 0x15e   :  { %2260 = vmatpush.bf16.msra.mxu0 %v3269_v7  ;;  %2286 = vmatpush.bf16.msra.mxu2 %v3717_v57  ;;  %v3378_v7 = vld [vmem:[%s6161_s7 + $0x39c] sm:$0xf0] }
 0x15f   :  { %v3381_v9 = vor.u32 %v4022_v6, %v3378_v7  ;;  %v3300_v57 = vld [vmem:[%s6161_s7 + $0x2e0] sm:$0xf] }
 0x160   :  { %2249 = vmatpush.bf16.msrb.mxu3 %v2989_v16  ;;  %2275 = vmatpush.bf16.msra.mxu1 %v3437_v60  ;;  %v320_v16 = vperm.slane %v5105_v14, 0  ;;  %v3301_v0 = vor.u32 %v4005_v58, %v3300_v57  ;;  %v3134_v57 = vld [vmem:[%s6161_s7 + $0x1ac] sm:$0xf0] }
 0x162   :  { %2261 = vmatpush.bf16.msra.mxu0 %v3241_v20  ;;  %2287 = vmatpush.bf16.msra.mxu2 %v3689_v63  ;;  %v321_v20 = vperm.slane %v5105_v14, 1  ;;  %v3049_v63 = vor.u32 %v3942_v56, %v3048_v53  ;;  %v4054_v53 = vld [vmem:[%s6161_s7 + $0x480] sm:$0xf0]  ;;  %v3960_v56 = vld [vmem:[%s6161_s7 + $0x194] sm:$0xf] }
 0x163   :  { %v3137_v2 = vor.u32 %v3960_v56, %v3134_v57  ;;  %v4082_v57 = vld [vmem:[%s6161_s7 + $0x560] sm:$0xf0] }
 0x164   :  { %2250 = vmatpush.bf16.msrb.mxu3 %v2961_v28  ;;  %2276 = vmatpush.bf16.msra.mxu1 %v3409_v3  ;;  %v3272_v3 = vld [vmem:[%s6161_s7 + $0x2a8] sm:$0xf] }
 0x165   :  { %v3273_v15 = vor.u32 %v3998_v4, %v3272_v3  ;;  %v3720_v3 = vld [vmem:[%s6161_s7 + $0x628] sm:$0xf]  ;;  %v4110_v4 = vld [vmem:[%s6161_s7 + $0x640] sm:$0xf0] }
 0x166   :  { %2262 = vmatpush.bf16.msra.mxu0 %v3213_v32  ;;  %2288 = vmatpush.bf16.msra.mxu2 %v3661_v5  ;;  %v3104_v32 = vld [vmem:[%s6161_s7 + $0x158] sm:$0xf]  ;;  %v3580_v5 = vld [vmem:[%s6161_s7 + $0x510] sm:$0xf] }
 0x167   :  { %v3105_v42 = vor.u32 %v3956_v36, %v3104_v32  ;;  %v3216_v36 = vld [vmem:[%s6161_s7 + $0x238] sm:$0xf] }
 0x168   :  { %2251 = vmatpush.bf16.msrb.mxu3 %v2933_v40  ;;  %2277 = vmatpush.bf16.msra.mxu1 %v3381_v9 }
 0x16a   :  { %2263 = vmatpush.bf16.msra.mxu0 %v3185_v44  ;;  %2289 = vmatpush.bf16.msra.mxu2 %v3633_v11  ;;  %v3076_v44 = vld [vmem:[%s6161_s7 + $0x120] sm:$0xf]  ;;  %v2992_v11 = vld [vmem:[%s6161_s7 + $0x78] sm:$0xf] }
 0x16b   :  { %v3077_v51 = vor.u32 %v3949_v46, %v3076_v44  ;;  %v3217_v44 = vor.u32 %v3984_v37, %v3216_v36  ;;  %v2936_v46 = vld [vmem:[%s6161_s7 + $0x8] sm:$0xf]  ;;  %v3302_v36 = vld [vmem:[%s6161_s7 + $0x2fc] sm:$0xf0] }
 0x16e   :  { %2264 = vmatpush.bf16.msra.mxu0 %v3157_v52  ;;  %2290 = vmatpush.bf16.msra.mxu2 %v3605_v17  ;;  %v3329_v52 = vor.u32 %v4012_v48, %v3328_v47  ;;  %v3991_v17 = vld [vmem:[%s6161_s7 + $0x288] sm:$0xf0]  ;;  %v3914_v47 = vld [vmem:[%s6161_s7 + $0x20] sm:$0xf0] }
 0x16f   :  { %v2937_v58 = vor.u32 %v3914_v47, %v2936_v46  ;;  %v3932_v46 = vld [vmem:[%s6161_s7 + $0xb4] sm:$0xf]  ;;  %v3022_v47 = vld [vmem:[%s6161_s7 + $0xcc] sm:$0xf0] }
 0x1a8   :  { %v683_v13 = vpop.f32.mrf.mxu1 }
 0x1a9   :  { %v684_v26 = vadd.f32 %v683_v13, %v321_v20 }
 0x1ae   :  { %v657_v18 = vpop.f32.mrf.mxu3  ;;  %v670_v19 = vpop.f32.mrf.mxu0 }
 0x1af   :  { %v658_v21 = vadd.f32 %v657_v18, %v320_v16  ;;  %v3244_v16 = vld [vmem:[%s6161_s7 + $0x270] sm:$0xf] }
 0x1b0   :  { %v685_v22 = vpop.f32.mrf.mxu1 }
 0x1b1   :  { %v671_v23 = vadd.f32 %v670_v19, %v658_v21  ;;  %v3581_v21 = vor.u32 %v4075_v8, %v3580_v5  ;;  %v3552_v22 = vld [vmem:[%s6161_s7 + $0x4d8] sm:$0xf]  ;;  %v3953_v5 = vld [vmem:[%s6161_s7 + $0x15c] sm:$0xf]  ;;  %v3358_v8 = vld [vmem:[%s6161_s7 + $0x36c] sm:$0xf0] }
 0x1b3   :  { %vm752_vm3 = vcmp.gt.f32.partialorder %v671_v23, 0.0  ;;  %v756_v27 = vmul.f32 0.2, %v671_v23 }
 0x1b4   :  { %v696_v28 = vpop.f32.mrf.mxu2 }
 0x1b5   :  { %v760_v29 = vsel %vm752_vm3, %v671_v23, %v756_v27  ;;  %v697_v30 = vadd.f32 %v696_v28, %v684_v26  ;;  %v4068_v23 = vld [vmem:[%s6161_s7 + $0x4f0] sm:$0xf0]  ;;  %v4131_v26 = vld [vmem:[%s6161_s7 + $0x6e8] sm:$0xf0]  ;;  %v2993_v28 = vor.u32 %v3928_v12, %v2992_v11  ;;  %v3721_v11 = vor.u32 %v4110_v4, %v3720_v3 }
 0x1b6   :  { %v5124_v33 = vpack.c.bf16 %v760_v29, %v760_v29  ;;  %v659_v34 = vpop.f32.mrf.mxu3  ;;  %v672_v35 = vpop.f32.mrf.mxu0  ;;  %v3245_v29 = vor.u32 %v3991_v17, %v3244_v16  ;;  %v3692_v16 = vld [vmem:[%s6161_s7 + $0x5f0] sm:$0xf]  ;;  %v4103_v17 = vld [vmem:[%s6161_s7 + $0x608] sm:$0xf0] }
 0x1b7   :  { %vm753_vm4 = vcmp.gt.f32.partialorder %v697_v30, 0.0  ;;  %v757_v39 = vmul.f32 0.2, %v697_v30  ;;  %v3553_v34 = vor.u32 %v4068_v23, %v3552_v22  ;;  %v3805_v35 = vor.u32 %v4131_v26, %v3804_v24  ;;  %v3330_v22 = vld [vmem:[%s6161_s7 + $0x334] sm:$0xf0] }
 0x1b8   :  { %v735_v40 = vpop.f32.mrf.mxu1  ;;  %2200 = vmatmul.bf16.vlgmr.msra.gmra.mxu3 %v5124_v33  ;;  %v3693_v24 = vor.u32 %v4103_v17, %v3692_v16  ;;  %v4033_v26 = vld [vmem:[%s6161_s7 + $0x3d8] sm:$0xf0] }
 0x1b9   :  { %v761_v41 = vsel %vm753_vm4, %v697_v30, %v757_v39  ;;  %2296 = vmatpush.bf16.msra.mxu3 %v3133_v31  ;;  %v736_v6 = vadd.f32 %v735_v40, %v323_v59  ;;  %v2964_v30 = vld [vmem:[%s6161_s7 + $0x40] sm:$0xf]  ;;  %v3921_v31 = vld [vmem:[%s6161_s7 + $0x58] sm:$0xf0]  ;;  %v3776_v40 = vld [vmem:[%s6161_s7 + $0x698] sm:$0xf] }
 0x1ba   :  { %v5139_v45 = vpack.c.bf16 %v761_v41, %v761_v41  ;;  %v4061_v39 = vld [vmem:[%s6161_s7 + $0x4b8] sm:$0xf0]  ;;  %v4124_v41 = vld [vmem:[%s6161_s7 + $0x6b0] sm:$0xf0] }
 0x1bb   :  { %v3525_v48 = vor.u32 %v4061_v39, %v3524_v38  ;;  %v3384_v39 = vld [vmem:[%s6161_s7 + $0x388] sm:$0xf] }
 0x1bc   :  { %v698_v50 = vpop.f32.mrf.mxu2  ;;  %2213 = vmatmul.bf16.vlgmr.msrb.gmra.mxu0 %v5139_v45 }
 0x1bd   :  { %2297 = vmatpush.bf16.msra.mxu3 %v3105_v42  ;;  %2309 = vmatpush.bf16.msrb.mxu0 %v3357_v43  ;;  %v2965_v43 = vor.u32 %v3921_v31, %v2964_v30  ;;  %v3188_v50 = vld [vmem:[%s6161_s7 + $0x200] sm:$0xf]  ;;  %v4096_v30 = vld [vmem:[%s6161_s7 + $0x5d0] sm:$0xf0]  ;;  %v3939_v31 = vld [vmem:[%s6161_s7 + $0xec] sm:$0xf] }
 0x1be   :  { %v709_v54 = vpop.f32.mrf.mxu3  ;;  %v722_v55 = vpop.f32.mrf.mxu0 }
 0x1bf   :  { %v710_v60 = vadd.f32 %v709_v54, %v322_v49  ;;  %v3777_v49 = vor.u32 %v4124_v41, %v3776_v40  ;;  %v3748_v54 = vld [vmem:[%s6161_s7 + $0x660] sm:$0xf]  ;;  %v4026_v40 = vld [vmem:[%s6161_s7 + $0x3a0] sm:$0xf0] }
 0x1c0   :  { %v737_v61 = vpop.f32.mrf.mxu1 }
 0x1c1   :  { %v723_v62 = vadd.f32 %v722_v55, %v710_v60  ;;  %2298 = vmatpush.bf16.msra.mxu3 %v3077_v51  ;;  %2310 = vmatpush.bf16.msrb.mxu0 %v3329_v52  ;;  %v3977_v51 = vld [vmem:[%s6161_s7 + $0x218] sm:$0xf0]  ;;  %v3496_v52 = vld [vmem:[%s6161_s7 + $0x468] sm:$0xf] }
 0x1c2   :  { %v4117_v55 = vld [vmem:[%s6161_s7 + $0x678] sm:$0xf0]  ;;  %v3189_v59 = vor.u32 %v3977_v51, %v3188_v50  ;;  %v3160_v60 = vld [vmem:[%s6161_s7 + $0x1c8] sm:$0xf]  ;;  %v3497_v61 = vor.u32 %v4054_v53, %v3496_v52  ;;  %v4072_v50 = vld [vmem:[%s6161_s7 + $0x514] sm:$0xf]  ;;  %v3385_v52 = vor.u32 %v4026_v40, %v3384_v39 }
 0x1c3   :  { %vm754_vm5 = vcmp.gt.f32.partialorder %v723_v62, 0.0  ;;  %v758_v7 = vmul.f32 0.2, %v723_v62  ;;  %v3582_v51 = vld [vmem:[%s6161_s7 + $0x52c] sm:$0xf0] }
 0x1c4   :  { %v748_v9 = vpop.f32.mrf.mxu2  ;;  %v4044_v39 = vld [vmem:[%s6161_s7 + $0x434] sm:$0xf]  ;;  %v3470_v40 = vld [vmem:[%s6161_s7 + $0x44c] sm:$0xf0] }
 0x1c5   :  { %v762_v13 = vsel %vm754_vm5, %v723_v62, %v758_v7  ;;  %v749_v14 = vadd.f32 %v748_v9, %v736_v6  ;;  %2299 = vmatpush.bf16.msra.mxu3 %v3049_v63  ;;  %2311 = vmatpush.bf16.msrb.mxu0 %v3301_v0  ;;  %v3749_v62 = vor.u32 %v4117_v55, %v3748_v54  ;;  %v3970_v63 = vld [vmem:[%s6161_s7 + $0x1e0] sm:$0xf0]  ;;  %v3468_v0 = vld [vmem:[%s6161_s7 + $0x430] sm:$0xf]  ;;  %v3106_v6 = vld [vmem:[%s6161_s7 + $0x174] sm:$0xf0] }
 0x1c6   :  { %v5195_v18 = vpack.c.bf16 %v762_v13, %v762_v13  ;;  %v711_v19 = vpop.f32.mrf.mxu3  ;;  %v724_v20 = vpop.f32.mrf.mxu0  ;;  %v4016_v7 = vld [vmem:[%s6161_s7 + $0x354] sm:$0xf]  ;;  %v3161_v9 = vor.u32 %v3970_v63, %v3160_v60  ;;  %v3440_v13 = vld [vmem:[%s6161_s7 + $0x3f8] sm:$0xf]  ;;  %v3608_v54 = vld [vmem:[%s6161_s7 + $0x548] sm:$0xf]  ;;  %v3025_v55 = vor.u32 %v3932_v46, %v3022_v47  ;;  %v3585_v60 = vor.u32 %v4072_v50, %v3582_v51 }
 0x1c7   :  { %vm755_vm6 = vcmp.gt.f32.partialorder %v749_v14, 0.0  ;;  %v759_v25 = vmul.f32 0.2, %v749_v14  ;;  %v3361_v12 = vor.u32 %v4016_v7, %v3358_v8  ;;  %v3946_v19 = vld [vmem:[%s6161_s7 + $0x124] sm:$0xf]  ;;  %v3609_v3 = vor.u32 %v4082_v57, %v3608_v54 }
 0x1c8   :  { %2226 = vmatmul.bf16.vlgmr.msrb.gmra.mxu1 %v5195_v18  ;;  %2252 = vmatmul.bf16.vlgmr.msrb.gmra.mxu3 %v5124_v33  ;;  %v3078_v20 = vld [vmem:[%s6161_s7 + $0x13c] sm:$0xf0]  ;;  %v4065_v63 = vld [vmem:[%s6161_s7 + $0x4dc] sm:$0xf]  ;;  %v3364_v47 = vld [vmem:[%s6161_s7 + $0x358] sm:$0xf]  ;;  %v3473_v50 = vor.u32 %v4044_v39, %v3470_v40 }
 0x1c9   :  { %v763_v27 = vsel %vm755_vm6, %v749_v14, %v759_v25  ;;  %2300 = vmatpush.bf16.msra.mxu3 %v3021_v10  ;;  %2312 = vmatpush.bf16.msrb.mxu0 %v3273_v15  ;;  %v3469_v10 = vor.u32 %v4047_v1, %v3468_v0  ;;  %v4040_v14 = vld [vmem:[%s6161_s7 + $0x410] sm:$0xf0]  ;;  %v3109_v15 = vor.u32 %v3953_v5, %v3106_v6  ;;  %v3412_v25 = vld [vmem:[%s6161_s7 + $0x3c0] sm:$0xf]  ;;  %v3554_v0 = vld [vmem:[%s6161_s7 + $0x4f4] sm:$0xf0] }
 0x1ca   :  { %v5217_v32 = vpack.c.bf16 %v763_v27, %v763_v27  ;;  %2322 = vmatpush.bf16.msrb.mxu1 %v3581_v21  ;;  %v4009_v21 = vld [vmem:[%s6161_s7 + $0x31c] sm:$0xf]  ;;  %v3441_v23 = vor.u32 %v4040_v14, %v3440_v13  ;;  %v3081_v27 = vor.u32 %v3946_v19, %v3078_v20  ;;  %v3413_v37 = vor.u32 %v4033_v26, %v3412_v25  ;;  %v4128_v1 = vld [vmem:[%s6161_s7 + $0x6d4] sm:$0xf]  ;;  %v3918_v6 = vld [vmem:[%s6161_s7 + $0x44] sm:$0xf] }
 0x1cb   :  { %v2966_v7 = vld [vmem:[%s6161_s7 + $0x5c] sm:$0xf0]  ;;  %v3557_v8 = vor.u32 %v4065_v63, %v3554_v0  ;;  %v4058_v13 = vld [vmem:[%s6161_s7 + $0x4a4] sm:$0xf]  ;;  %v3911_v19 = vld [vmem:[%s6161_s7 + $0xc] sm:$0xf] }
 0x1cc   :  { %v750_v42 = vpop.f32.mrf.mxu2  ;;  %2239 = vmatmul.bf16.vlgmr.msrb.gmra.mxu2 %v5217_v32  ;;  %2265 = vmatmul.bf16.vlgmr.msra.gmra.mxu0 %v5139_v45  ;;  %v3526_v14 = vld [vmem:[%s6161_s7 + $0x4bc] sm:$0xf0]  ;;  %v2969_v16 = vor.u32 %v3918_v6, %v2966_v7  ;;  %v2938_v20 = vld [vmem:[%s6161_s7 + $0x24] sm:$0xf0]  ;;  %v4051_v25 = vld [vmem:[%s6161_s7 + $0x46c] sm:$0xf] }
 0x1cd   :  { %2301 = vmatpush.bf16.msra.mxu3 %v2993_v28  ;;  %2313 = vmatpush.bf16.msrb.mxu0 %v3245_v29  ;;  %v3333_v28 = vor.u32 %v4009_v21, %v3330_v22  ;;  %v3664_v29 = vld [vmem:[%s6161_s7 + $0x5b8] sm:$0xf]  ;;  %v3529_v21 = vor.u32 %v4058_v13, %v3526_v14  ;;  %v3498_v26 = vld [vmem:[%s6161_s7 + $0x484] sm:$0xf0]  ;;  %v3957_v46 = vld [vmem:[%s6161_s7 + $0x178] sm:$0xf0] }
 0x1ce   :  { %2323 = vmatpush.bf16.msrb.mxu1 %v3553_v34  ;;  %2335 = vmatpush.bf16.msrb.mxu2 %v3805_v35  ;;  %v3050_v34 = vld [vmem:[%s6161_s7 + $0x104] sm:$0xf0]  ;;  %v4002_v35 = vld [vmem:[%s6161_s7 + $0x2e4] sm:$0xf]  ;;  %v3665_v38 = vor.u32 %v4096_v30, %v3664_v29  ;;  %v3140_v29 = vld [vmem:[%s6161_s7 + $0x198] sm:$0xf] }
 0x1cf   :  { %v3053_v41 = vor.u32 %v3939_v31, %v3050_v34  ;;  %v3305_v42 = vor.u32 %v4002_v35, %v3302_v36  ;;  %v3964_v30 = vld [vmem:[%s6161_s7 + $0x1b0] sm:$0xf0]  ;;  %v2941_v31 = vor.u32 %v3911_v19, %v2938_v20  ;;  %v3967_v35 = vld [vmem:[%s6161_s7 + $0x1cc] sm:$0xf]  ;;  %v3501_v36 = vor.u32 %v4051_v25, %v3498_v26  ;;  %v3694_v57 = vld [vmem:[%s6161_s7 + $0x60c] sm:$0xf0] }
 0x1d0   :  { %v4030_v0 = vld [vmem:[%s6161_s7 + $0x3c4] sm:$0xf]  ;;  %v3056_v6 = vld [vmem:[%s6161_s7 + $0xf0] sm:$0xf]  ;;  %v3943_v7 = vld [vmem:[%s6161_s7 + $0x108] sm:$0xf0] }
 0x1d1   :  { %2302 = vmatpush.bf16.msra.mxu3 %v2965_v43  ;;  %2314 = vmatpush.bf16.msrb.mxu0 %v3217_v44  ;;  %v3636_v43 = vld [vmem:[%s6161_s7 + $0x580] sm:$0xf]  ;;  %v4089_v44 = vld [vmem:[%s6161_s7 + $0x598] sm:$0xf0]  ;;  %v4023_v13 = vld [vmem:[%s6161_s7 + $0x38c] sm:$0xf] }
 0x1d2   :  { %2324 = vmatpush.bf16.msrb.mxu1 %v3525_v48  ;;  %2336 = vmatpush.bf16.msrb.mxu2 %v3777_v49  ;;  %v3995_v48 = vld [vmem:[%s6161_s7 + $0x2ac] sm:$0xf]  ;;  %v3274_v49 = vld [vmem:[%s6161_s7 + $0x2c4] sm:$0xf0]  ;;  %v3637_v53 = vor.u32 %v4089_v44, %v3636_v43  ;;  %v3112_v44 = vld [vmem:[%s6161_s7 + $0x160] sm:$0xf] }
 0x1d3   :  { %v3277_v56 = vor.u32 %v3995_v48, %v3274_v49  ;;  %v3722_v43 = vld [vmem:[%s6161_s7 + $0x644] sm:$0xf0]  ;;  %v4020_v48 = vld [vmem:[%s6161_s7 + $0x370] sm:$0xf0]  ;;  %v3113_v54 = vor.u32 %v3957_v46, %v3112_v44  ;;  %v3028_v19 = vld [vmem:[%s6161_s7 + $0xb8] sm:$0xf] }
 0x1d4   :  { %v3386_v14 = vld [vmem:[%s6161_s7 + $0x3a4] sm:$0xf0]  ;;  %v3936_v20 = vld [vmem:[%s6161_s7 + $0xd0] sm:$0xf0]  ;;  %v4069_v39 = vld [vmem:[%s6161_s7 + $0x4f8] sm:$0xf0] }
 0x1d5   :  { %2303 = vmatpush.bf16.msra.mxu3 %v2937_v58  ;;  %2315 = vmatpush.bf16.msrb.mxu0 %v3189_v59  ;;  %v3925_v58 = vld [vmem:[%s6161_s7 + $0x7c] sm:$0xf]  ;;  %v2994_v59 = vld [vmem:[%s6161_s7 + $0x94] sm:$0xf0]  ;;  %v3389_v25 = vor.u32 %v4023_v13, %v3386_v14  ;;  %v2972_v46 = vld [vmem:[%s6161_s7 + $0x48] sm:$0xf] }
 0x1d6   :  { %2325 = vmatpush.bf16.msrb.mxu1 %v3497_v61  ;;  %2337 = vmatpush.bf16.msrb.mxu2 %v3749_v62  ;;  %v3988_v61 = vld [vmem:[%s6161_s7 + $0x274] sm:$0xf]  ;;  %v3246_v62 = vld [vmem:[%s6161_s7 + $0x28c] sm:$0xf0]  ;;  %v2997_v4 = vor.u32 %v3925_v58, %v2994_v59  ;;  %v3084_v58 = vld [vmem:[%s6161_s7 + $0x128] sm:$0xf] }
 0x1d7   :  { %v3249_v5 = vor.u32 %v3988_v61, %v3246_v62  ;;  %v3950_v59 = vld [vmem:[%s6161_s7 + $0x140] sm:$0xf0]  ;;  %v4013_v61 = vld [vmem:[%s6161_s7 + $0x338] sm:$0xf0]  ;;  %v3812_v40 = vld [vmem:[%s6161_s7 + $0x6d8] sm:$0xf] }
 0x1d8   :  { %2278 = vmatmul.bf16.vlgmr.msra.gmra.mxu1 %v5195_v18  ;;  %2304 = vmatmul.bf16.vlgmr.msra.gmra.mxu3 %v5124_v33  ;;  %v3476_v13 = vld [vmem:[%s6161_s7 + $0x438] sm:$0xf]  ;;  %v4048_v14 = vld [vmem:[%s6161_s7 + $0x450] sm:$0xf0] }
 0x1d9   :  { %2348 = vmatpush.bf16.msrb.mxu3 %v3137_v2  ;;  %2316 = vmatpush.bf16.msrb.mxu0 %v3161_v9  ;;  %v3806_v2 = vld [vmem:[%s6161_s7 + $0x6ec] sm:$0xf0] }
 0x1da   :  { %2326 = vmatpush.bf16.msrb.mxu1 %v3469_v10  ;;  %2338 = vmatpush.bf16.msrb.mxu2 %v3721_v11  ;;  %v3809_v9 = vor.u32 %v4128_v1, %v3806_v2  ;;  %v3981_v10 = vld [vmem:[%s6161_s7 + $0x23c] sm:$0xf]  ;;  %v3218_v11 = vld [vmem:[%s6161_s7 + $0x254] sm:$0xf0]  ;;  %v3414_v1 = vld [vmem:[%s6161_s7 + $0x3dc] sm:$0xf0]  ;;  %v3085_v2 = vor.u32 %v3950_v59, %v3084_v58 }
 0x1db   :  { %v3221_v17 = vor.u32 %v3981_v10, %v3218_v11  ;;  %v3417_v10 = vor.u32 %v4030_v0, %v3414_v1  ;;  %v2944_v58 = vld [vmem:[%s6161_s7 + $0x10] sm:$0xf]  ;;  %v3915_v59 = vld [vmem:[%s6161_s7 + $0x28] sm:$0xf0] }
 0x1dc   :  { %2291 = vmatmul.bf16.vlgmr.msra.gmra.mxu2 %v5217_v32  ;;  %2317 = vmatmul.bf16.vlgmr.msrb.gmra.mxu0 %v5139_v45  ;;  %v3504_v0 = vld [vmem:[%s6161_s7 + $0x470] sm:$0xf]  ;;  %v4055_v1 = vld [vmem:[%s6161_s7 + $0x488] sm:$0xf0] }
 0x1dd   :  { %2349 = vmatpush.bf16.msrb.mxu3 %v3109_v15  ;;  %2361 = vmatpush.bf16.msra.mxu0 %v3361_v12  ;;  %v4121_v15 = vld [vmem:[%s6161_s7 + $0x69c] sm:$0xf]  ;;  %v3778_v12 = vld [vmem:[%s6161_s7 + $0x6b4] sm:$0xf0] }
 0x1de   :  { %2327 = vmatpush.bf16.msrb.mxu1 %v3441_v23  ;;  %2339 = vmatpush.bf16.msrb.mxu2 %v3693_v24  ;;  %v3781_v22 = vor.u32 %v4121_v15, %v3778_v12  ;;  %v3974_v23 = vld [vmem:[%s6161_s7 + $0x204] sm:$0xf]  ;;  %v3190_v24 = vld [vmem:[%s6161_s7 + $0x21c] sm:$0xf0]  ;;  %v3057_v15 = vor.u32 %v3943_v7, %v3056_v6  ;;  %v2945_v6 = vor.u32 %v3915_v59, %v2944_v58  ;;  %v3933_v58 = vld [vmem:[%s6161_s7 + $0xbc] sm:$0xf] }
 0x1df   :  { %v3193_v34 = vor.u32 %v3974_v23, %v3190_v24  ;;  %v3588_v23 = vld [vmem:[%s6161_s7 + $0x518] sm:$0xf]  ;;  %v4076_v24 = vld [vmem:[%s6161_s7 + $0x530] sm:$0xf0] }
 0x1e0   :  { %v3030_v59 = vld [vmem:[%s6161_s7 + $0xd4] sm:$0xf0] }
 0x1e1   :  { %2350 = vmatpush.bf16.msrb.mxu3 %v3081_v27  ;;  %2362 = vmatpush.bf16.msra.mxu0 %v3333_v28  ;;  %v4114_v27 = vld [vmem:[%s6161_s7 + $0x664] sm:$0xf]  ;;  %v3750_v28 = vld [vmem:[%s6161_s7 + $0x67c] sm:$0xf0] }
 0x1e2   :  { %2328 = vmatpush.bf16.msrb.mxu1 %v3413_v37  ;;  %2340 = vmatpush.bf16.msrb.mxu2 %v3665_v38  ;;  %v3753_v37 = vor.u32 %v4114_v27, %v3750_v28  ;;  %v3162_v38 = vld [vmem:[%s6161_s7 + $0x1e4] sm:$0xf0]  ;;  %v4079_v27 = vld [vmem:[%s6161_s7 + $0x54c] sm:$0xf]  ;;  %v3029_v28 = vor.u32 %v3936_v20, %v3028_v19  ;;  %v3114_v19 = vld [vmem:[%s6161_s7 + $0x17c] sm:$0xf0] }
 0x1e3   :  { %v3165_v49 = vor.u32 %v3967_v35, %v3162_v38  ;;  %v3589_v35 = vor.u32 %v4076_v24, %v3588_v23  ;;  %v3560_v38 = vld [vmem:[%s6161_s7 + $0x4e0] sm:$0xf]  ;;  %v4017_v20 = vld [vmem:[%s6161_s7 + $0x35c] sm:$0xf]  ;;  %v3477_v23 = vor.u32 %v4048_v14, %v3476_v13 }
 0x1e4   :  { %v3562_v13 = vld [vmem:[%s6161_s7 + $0x4fc] sm:$0xf0]  ;;  %v4129_v14 = vld [vmem:[%s6161_s7 + $0x6dc] sm:$0xf] }
 0x1e5   :  { %2351 = vmatpush.bf16.msrb.mxu3 %v3053_v41  ;;  %2363 = vmatpush.bf16.msra.mxu0 %v3305_v42  ;;  %v3141_v41 = vor.u32 %v3964_v30, %v3140_v29  ;;  %v4107_v42 = vld [vmem:[%s6161_s7 + $0x62c] sm:$0xf]  ;;  %v3610_v30 = vld [vmem:[%s6161_s7 + $0x564] sm:$0xf0] }
 0x1e6   :  { %2329 = vmatpush.bf16.msrb.mxu1 %v3385_v52  ;;  %2341 = vmatpush.bf16.msrb.mxu2 %v3637_v53  ;;  %v3725_v51 = vor.u32 %v4107_v42, %v3722_v43  ;;  %v4037_v52 = vld [vmem:[%s6161_s7 + $0x3fc] sm:$0xf]  ;;  %v3442_v53 = vld [vmem:[%s6161_s7 + $0x414] sm:$0xf0]  ;;  %v3613_v42 = vor.u32 %v4079_v27, %v3610_v30  ;;  %v4104_v30 = vld [vmem:[%s6161_s7 + $0x610] sm:$0xf0] }
 0x1e7   :  { %v3445_v62 = vor.u32 %v4037_v52, %v3442_v53  ;;  %v3532_v52 = vld [vmem:[%s6161_s7 + $0x4a8] sm:$0xf]  ;;  %v4062_v53 = vld [vmem:[%s6161_s7 + $0x4c0] sm:$0xf0] }
 0x1e9   :  { %2352 = vmatpush.bf16.msrb.mxu3 %v3025_v55  ;;  %2364 = vmatpush.bf16.msra.mxu0 %v3277_v56  ;;  %v3365_v55 = vor.u32 %v4020_v48, %v3364_v47  ;;  %v4100_v56 = vld [vmem:[%s6161_s7 + $0x5f4] sm:$0xf]  ;;  %v3922_v47 = vld [vmem:[%s6161_s7 + $0x60] sm:$0xf0]  ;;  %v3561_v48 = vor.u32 %v4069_v39, %v3560_v38  ;;  %v3420_v39 = vld [vmem:[%s6161_s7 + $0x3c8] sm:$0xf] }
 0x1ea   :  { %2374 = vmatpush.bf16.msra.mxu1 %v3585_v60  ;;  %2342 = vmatpush.bf16.msrb.mxu2 %v3609_v3  ;;  %v3336_v60 = vld [vmem:[%s6161_s7 + $0x320] sm:$0xf]  ;;  %v3697_v63 = vor.u32 %v4100_v56, %v3694_v57  ;;  %v2973_v56 = vor.u32 %v3922_v47, %v2972_v46  ;;  %v3940_v46 = vld [vmem:[%s6161_s7 + $0xf4] sm:$0xf]  ;;  %v3058_v47 = vld [vmem:[%s6161_s7 + $0x10c] sm:$0xf0] }
 0x1eb   :  { %2330 = vmatmul.bf16.vlgmr.msrb.gmra.mxu1 %v5195_v18  ;;  %v3337_v3 = vor.u32 %v4013_v61, %v3336_v60  ;;  %v3533_v60 = vor.u32 %v4062_v53, %v3532_v52  ;;  %v3392_v52 = vld [vmem:[%s6161_s7 + $0x390] sm:$0xf]  ;;  %v4027_v53 = vld [vmem:[%s6161_s7 + $0x3a8] sm:$0xf0] }
 0x1ed   :  { %2353 = vmatpush.bf16.msrb.mxu3 %v2997_v4  ;;  %2365 = vmatpush.bf16.msra.mxu0 %v3249_v5  ;;  %v4093_v4 = vld [vmem:[%s6161_s7 + $0x5bc] sm:$0xf]  ;;  %v3666_v5 = vld [vmem:[%s6161_s7 + $0x5d4] sm:$0xf0] }
 0x1ee   :  { %2375 = vmatpush.bf16.msra.mxu1 %v3557_v8  ;;  %2387 = vmatpush.bf16.msra.mxu2 %v3809_v9  ;;  %v3308_v8 = vld [vmem:[%s6161_s7 + $0x2e8] sm:$0xf]  ;;  %v4006_v9 = vld [vmem:[%s6161_s7 + $0x300] sm:$0xf0]  ;;  %v3669_v11 = vor.u32 %v4093_v4, %v3666_v5  ;;  %v3961_v4 = vld [vmem:[%s6161_s7 + $0x19c] sm:$0xf] }
 0x1ef   :  { %2343 = vmatmul.bf16.vlgmr.msrb.gmra.mxu2 %v5217_v32  ;;  %v3309_v12 = vor.u32 %v4006_v9, %v3308_v8  ;;  %v3142_v5 = vld [vmem:[%s6161_s7 + $0x1b4] sm:$0xf0]  ;;  %v3168_v8 = vld [vmem:[%s6161_s7 + $0x1d0] sm:$0xf]  ;;  %v3505_v9 = vor.u32 %v4055_v1, %v3504_v0  ;;  %v3393_v0 = vor.u32 %v4027_v53, %v3392_v52  ;;  %v4045_v52 = vld [vmem:[%s6161_s7 + $0x43c] sm:$0xf] }
 0x1f0   :  { %v3478_v53 = vld [vmem:[%s6161_s7 + $0x454] sm:$0xf0] }
 0x1f1   :  { %2354 = vmatpush.bf16.msrb.mxu3 %v2969_v16  ;;  %2366 = vmatpush.bf16.msra.mxu0 %v3221_v17  ;;  %v4086_v16 = vld [vmem:[%s6161_s7 + $0x584] sm:$0xf]  ;;  %v3638_v17 = vld [vmem:[%s6161_s7 + $0x59c] sm:$0xf0] }
 0x1f2   :  { %2376 = vmatpush.bf16.msra.mxu1 %v3529_v21  ;;  %2388 = vmatpush.bf16.msra.mxu2 %v3781_v22  ;;  %v3280_v21 = vld [vmem:[%s6161_s7 + $0x2b0] sm:$0xf]  ;;  %v3999_v22 = vld [vmem:[%s6161_s7 + $0x2c8] sm:$0xf0]  ;;  %v3641_v26 = vor.u32 %v4086_v16, %v3638_v17  ;;  %v3954_v17 = vld [vmem:[%s6161_s7 + $0x164] sm:$0xf] }
 0x1f3   :  { %v3281_v29 = vor.u32 %v3999_v22, %v3280_v21  ;;  %v4111_v16 = vld [vmem:[%s6161_s7 + $0x648] sm:$0xf0]  ;;  %v3366_v21 = vld [vmem:[%s6161_s7 + $0x374] sm:$0xf0]  ;;  %v3117_v27 = vor.u32 %v3954_v17, %v3114_v19 }
 0x1f4   :  { %v3919_v19 = vld [vmem:[%s6161_s7 + $0x4c] sm:$0xf] }
 0x1f5   :  { %2355 = vmatpush.bf16.msrb.mxu3 %v2941_v31  ;;  %2367 = vmatpush.bf16.msra.mxu0 %v3193_v34  ;;  %v3000_v31 = vld [vmem:[%s6161_s7 + $0x80] sm:$0xf]  ;;  %v3929_v34 = vld [vmem:[%s6161_s7 + $0x98] sm:$0xf0] }
 0x1f6   :  { %2377 = vmatpush.bf16.msra.mxu1 %v3501_v36  ;;  %2389 = vmatpush.bf16.msra.mxu2 %v3753_v37  ;;  %v3252_v36 = vld [vmem:[%s6161_s7 + $0x278] sm:$0xf]  ;;  %v3992_v37 = vld [vmem:[%s6161_s7 + $0x290] sm:$0xf0]  ;;  %v3001_v43 = vor.u32 %v3929_v34, %v3000_v31  ;;  %v3947_v31 = vld [vmem:[%s6161_s7 + $0x12c] sm:$0xf] }
 0x1f7   :  { %v3253_v44 = vor.u32 %v3992_v37, %v3252_v36  ;;  %v3086_v34 = vld [vmem:[%s6161_s7 + $0x144] sm:$0xf0]  ;;  %v3338_v36 = vld [vmem:[%s6161_s7 + $0x33c] sm:$0xf0] }
 0x1f8   :  { %2356 = vmatmul.bf16.vlgmr.msrb.gmra.mxu3 %v5124_v33 }
 0x1f9   :  { %2400 = vmatpush.bf16.msra.mxu3 %v3141_v41  ;;  %2368 = vmatpush.bf16.msra.mxu0 %v3165_v49  ;;  %v4132_v41 = vld [vmem:[%s6161_s7 + $0x6f0] sm:$0xf0] }
 0x1fa   :  { %2378 = vmatpush.bf16.msra.mxu1 %v3473_v50  ;;  %2390 = vmatpush.bf16.msra.mxu2 %v3725_v51  ;;  %v3813_v49 = vor.u32 %v4132_v41, %v3812_v40  ;;  %v3224_v50 = vld [vmem:[%s6161_s7 + $0x240] sm:$0xf]  ;;  %v3985_v51 = vld [vmem:[%s6161_s7 + $0x258] sm:$0xf0]  ;;  %v4034_v40 = vld [vmem:[%s6161_s7 + $0x3e0] sm:$0xf0]  ;;  %v3089_v41 = vor.u32 %v3947_v31, %v3086_v34 }
 0x1fb   :  { %v3225_v57 = vor.u32 %v3985_v51, %v3224_v50  ;;  %v3421_v50 = vor.u32 %v4034_v40, %v3420_v39  ;;  %v3912_v31 = vld [vmem:[%s6161_s7 + $0x14] sm:$0xf]  ;;  %v2946_v34 = vld [vmem:[%s6161_s7 + $0x2c] sm:$0xf0] }
 0x1fc   :  { %2369 = vmatmul.bf16.vlgmr.msra.gmra.mxu0 %v5139_v45  ;;  %v4052_v39 = vld [vmem:[%s6161_s7 + $0x474] sm:$0xf]  ;;  %v3506_v40 = vld [vmem:[%s6161_s7 + $0x48c] sm:$0xf0] }
 0x1fd   :  { %2401 = vmatpush.bf16.msra.mxu3 %v3113_v54  ;;  %2413 = vmatpush.bf16.msrb.mxu0 %v3365_v55  ;;  %v3784_v54 = vld [vmem:[%s6161_s7 + $0x6a0] sm:$0xf]  ;;  %v4125_v55 = vld [vmem:[%s6161_s7 + $0x6b8] sm:$0xf0] }
 0x1fe   :  { %2379 = vmatpush.bf16.msra.mxu1 %v3445_v62  ;;  %2391 = vmatpush.bf16.msra.mxu2 %v3697_v63  ;;  %v3785_v61 = vor.u32 %v4125_v55, %v3784_v54  ;;  %v3196_v62 = vld [vmem:[%s6161_s7 + $0x208] sm:$0xf]  ;;  %v3978_v63 = vld [vmem:[%s6161_s7 + $0x220] sm:$0xf0]  ;;  %v3061_v54 = vor.u32 %v3940_v46, %v3058_v47  ;;  %v2949_v46 = vor.u32 %v3912_v31, %v2946_v34  ;;  %v3036_v34 = vld [vmem:[%s6161_s7 + $0xc0] sm:$0xf] }
 0x1ff   :  { %v3197_v7 = vor.u32 %v3978_v63, %v3196_v62  ;;  %v4073_v62 = vld [vmem:[%s6161_s7 + $0x51c] sm:$0xf]  ;;  %v3590_v63 = vld [vmem:[%s6161_s7 + $0x534] sm:$0xf0]  ;;  %v3646_v31 = vld [vmem:[%s6161_s7 + $0x5a4] sm:$0xf0] }
 0x201   :  { %2402 = vmatpush.bf16.msra.mxu3 %v3085_v2  ;;  %2414 = vmatpush.bf16.msrb.mxu0 %v3337_v3  ;;  %v3756_v2 = vld [vmem:[%s6161_s7 + $0x668] sm:$0xf]  ;;  %v4118_v3 = vld [vmem:[%s6161_s7 + $0x680] sm:$0xf0] }
 0x202   :  { %2380 = vmatpush.bf16.msra.mxu1 %v3417_v10  ;;  %2392 = vmatpush.bf16.msra.mxu2 %v3669_v11  ;;  %v3757_v10 = vor.u32 %v4118_v3, %v3756_v2  ;;  %v3971_v11 = vld [vmem:[%s6161_s7 + $0x1e8] sm:$0xf0]  ;;  %v3616_v2 = vld [vmem:[%s6161_s7 + $0x550] sm:$0xf]  ;;  %v3033_v3 = vor.u32 %v3933_v58, %v3030_v59  ;;  %v3958_v58 = vld [vmem:[%s6161_s7 + $0x180] sm:$0xf0] }
 0x203   :  { %v3169_v22 = vor.u32 %v3971_v11, %v3168_v8  ;;  %v3593_v8 = vor.u32 %v4073_v62, %v3590_v63  ;;  %v4066_v11 = vld [vmem:[%s6161_s7 + $0x4e4] sm:$0xf]  ;;  %v3372_v59 = vld [vmem:[%s6161_s7 + $0x360] sm:$0xf]  ;;  %v3481_v62 = vor.u32 %v4045_v52, %v3478_v53  ;;  %v3993_v52 = vld [vmem:[%s6161_s7 + $0x298] sm:$0xf0] }
 0x204   :  { %v3568_v53 = vld [vmem:[%s6161_s7 + $0x4e8] sm:$0xf] }
 0x205   :  { %2403 = vmatpush.bf16.msra.mxu3 %v3057_v15  ;;  %2415 = vmatpush.bf16.msrb.mxu0 %v3309_v12  ;;  %v3145_v15 = vor.u32 %v3961_v4, %v3142_v5  ;;  %v3728_v12 = vld [vmem:[%s6161_s7 + $0x630] sm:$0xf]  ;;  %v4083_v5 = vld [vmem:[%s6161_s7 + $0x568] sm:$0xf0] }
 0x206   :  { %2381 = vmatpush.bf16.msra.mxu1 %v3389_v25  ;;  %2393 = vmatpush.bf16.msra.mxu2 %v3641_v26  ;;  %v3729_v24 = vor.u32 %v4111_v16, %v3728_v12  ;;  %v3448_v25 = vld [vmem:[%s6161_s7 + $0x400] sm:$0xf]  ;;  %v4041_v26 = vld [vmem:[%s6161_s7 + $0x418] sm:$0xf0]  ;;  %v3617_v12 = vor.u32 %v4083_v5, %v3616_v2  ;;  %v3702_v5 = vld [vmem:[%s6161_s7 + $0x614] sm:$0xf0] }
 0x207   :  { %v3449_v37 = vor.u32 %v4041_v26, %v3448_v25  ;;  %v4059_v25 = vld [vmem:[%s6161_s7 + $0x4ac] sm:$0xf]  ;;  %v3534_v26 = vld [vmem:[%s6161_s7 + $0x4c4] sm:$0xf0] }
 0x209   :  { %2404 = vmatpush.bf16.msra.mxu3 %v3029_v28  ;;  %2416 = vmatpush.bf16.msrb.mxu0 %v3281_v29  ;;  %v3369_v28 = vor.u32 %v4017_v20, %v3366_v21  ;;  %v3700_v29 = vld [vmem:[%s6161_s7 + $0x5f8] sm:$0xf]  ;;  %v2974_v20 = vld [vmem:[%s6161_s7 + $0x64] sm:$0xf0]  ;;  %v3565_v21 = vor.u32 %v4066_v11, %v3562_v13  ;;  %v4031_v13 = vld [vmem:[%s6161_s7 + $0x3cc] sm:$0xf] }
 0x20a   :  { %2426 = vmatpush.bf16.msrb.mxu1 %v3589_v35  ;;  %2394 = vmatpush.bf16.msra.mxu2 %v3613_v42  ;;  %v4010_v35 = vld [vmem:[%s6161_s7 + $0x324] sm:$0xf]  ;;  %v3701_v38 = vor.u32 %v4104_v30, %v3700_v29  ;;  %v2977_v29 = vor.u32 %v3919_v19, %v2974_v20  ;;  %v3064_v19 = vld [vmem:[%s6161_s7 + $0xf8] sm:$0xf]  ;;  %v3944_v20 = vld [vmem:[%s6161_s7 + $0x110] sm:$0xf0] }
 0x20b   :  { %2382 = vmatmul.bf16.vlgmr.msra.gmra.mxu1 %v5195_v18  ;;  %v3341_v42 = vor.u32 %v4010_v35, %v3338_v36  ;;  %v3537_v35 = vor.u32 %v4059_v25, %v3534_v26  ;;  %v4024_v25 = vld [vmem:[%s6161_s7 + $0x394] sm:$0xf]  ;;  %v3394_v26 = vld [vmem:[%s6161_s7 + $0x3ac] sm:$0xf0] }
 0x20d   :  { %2405 = vmatpush.bf16.msra.mxu3 %v3001_v43  ;;  %2417 = vmatpush.bf16.msrb.mxu0 %v3253_v44  ;;  %v3672_v43 = vld [vmem:[%s6161_s7 + $0x5c0] sm:$0xf]  ;;  %v4097_v44 = vld [vmem:[%s6161_s7 + $0x5d8] sm:$0xf0] }
 0x20e   :  { %2427 = vmatpush.bf16.msrb.mxu1 %v3561_v48  ;;  %2439 = vmatpush.bf16.msrb.mxu2 %v3813_v49  ;;  %v4003_v48 = vld [vmem:[%s6161_s7 + $0x2ec] sm:$0xf]  ;;  %v3310_v49 = vld [vmem:[%s6161_s7 + $0x304] sm:$0xf0]  ;;  %v3673_v51 = vor.u32 %v4097_v44, %v3672_v43  ;;  %v3148_v43 = vld [vmem:[%s6161_s7 + $0x1a0] sm:$0xf] }
 0x20f   :  { %2395 = vmatmul.bf16.vlgmr.msra.gmra.mxu2 %v5217_v32  ;;  %v3313_v55 = vor.u32 %v4003_v48, %v3310_v49  ;;  %v3965_v44 = vld [vmem:[%s6161_s7 + $0x1b8] sm:$0xf0]  ;;  %v3968_v48 = vld [vmem:[%s6161_s7 + $0x1d4] sm:$0xf]  ;;  %v3509_v49 = vor.u32 %v4052_v39, %v3506_v40  ;;  %v3596_v39 = vld [vmem:[%s6161_s7 + $0x520] sm:$0xf] }
 0x210   :  { %v4077_v40 = vld [vmem:[%s6161_s7 + $0x538] sm:$0xf0] }
 0x211   :  { %2406 = vmatpush.bf16.msra.mxu3 %v2973_v56  ;;  %2418 = vmatpush.bf16.msrb.mxu0 %v3225_v57  ;;  %v3644_v56 = vld [vmem:[%s6161_s7 + $0x588] sm:$0xf]  ;;  %v4090_v57 = vld [vmem:[%s6161_s7 + $0x5a0] sm:$0xf0] }
 0x212   :  { %2428 = vmatpush.bf16.msrb.mxu1 %v3533_v60  ;;  %2440 = vmatpush.bf16.msrb.mxu2 %v3785_v61  ;;  %v3996_v60 = vld [vmem:[%s6161_s7 + $0x2b4] sm:$0xf]  ;;  %v3282_v61 = vld [vmem:[%s6161_s7 + $0x2cc] sm:$0xf0]  ;;  %v3645_v1 = vor.u32 %v4090_v57, %v3644_v56  ;;  %v3120_v57 = vld [vmem:[%s6161_s7 + $0x168] sm:$0xf] }
 0x213   :  { %v3285_v4 = vor.u32 %v3996_v60, %v3282_v61  ;;  %v3730_v56 = vld [vmem:[%s6161_s7 + $0x64c] sm:$0xf0]  ;;  %v4021_v60 = vld [vmem:[%s6161_s7 + $0x378] sm:$0xf0]  ;;  %v3121_v2 = vor.u32 %v3958_v58, %v3120_v57  ;;  %v6006_v58 = vld [vmem:[%s6163_s8] sm:$0xff] }
 0x215   :  { %2407 = vmatpush.bf16.msra.mxu3 %v2945_v6  ;;  %2419 = vmatpush.bf16.msrb.mxu0 %v3197_v7  ;;  %v3926_v6 = vld [vmem:[%s6161_s7 + $0x84] sm:$0xf]  ;;  %v3002_v7 = vld [vmem:[%s6161_s7 + $0x9c] sm:$0xf0] }
 0x216   :  { %2429 = vmatpush.bf16.msrb.mxu1 %v3505_v9  ;;  %2441 = vmatpush.bf16.msrb.mxu2 %v3757_v10  ;;  %v3989_v9 = vld [vmem:[%s6161_s7 + $0x27c] sm:$0xf]  ;;  %v3254_v10 = vld [vmem:[%s6161_s7 + $0x294] sm:$0xf0]  ;;  %v3005_v16 = vor.u32 %v3926_v6, %v3002_v7  ;;  %v3092_v6 = vld [vmem:[%s6161_s7 + $0x130] sm:$0xf] }
 0x217   :  { %v3257_v17 = vor.u32 %v3989_v9, %v3254_v10  ;;  %v3951_v7 = vld [vmem:[%s6161_s7 + $0x148] sm:$0xf0]  ;;  %v4014_v9 = vld [vmem:[%s6161_s7 + $0x340] sm:$0xf0] }
 0x218   :  { %2408 = vmatmul.bf16.vlgmr.msra.gmra.mxu3 %v5124_v33 }
 0x219   :  { %2452 = vmatpush.bf16.msrb.mxu3 %v3145_v15  ;;  %2420 = vmatpush.bf16.msrb.mxu0 %v3169_v22  ;;  %v3814_v15 = vld [vmem:[%s6161_s7 + $0x6f4] sm:$0xf0] }
 0x21a   :  { %2430 = vmatpush.bf16.msrb.mxu1 %v3477_v23  ;;  %2442 = vmatpush.bf16.msrb.mxu2 %v3729_v24  ;;  %v3817_v22 = vor.u32 %v4129_v14, %v3814_v15  ;;  %v3982_v23 = vld [vmem:[%s6161_s7 + $0x244] sm:$0xf]  ;;  %v3226_v24 = vld [vmem:[%s6161_s7 + $0x25c] sm:$0xf0]  ;;  %v3422_v14 = vld [vmem:[%s6161_s7 + $0x3e4] sm:$0xf0]  ;;  %v3093_v15 = vor.u32 %v3951_v7, %v3092_v6 }
 0x21b   :  { %v3229_v30 = vor.u32 %v3982_v23, %v3226_v24  ;;  %v3425_v23 = vor.u32 %v4031_v13, %v3422_v14  ;;  %v4063_v6 = vld [vmem:[%s6161_s7 + $0x4c8] sm:$0xf0]  ;;  %v3792_v7 = vld [vmem:[%s6161_s7 + $0x6a8] sm:$0xf]  ;;  %v2952_v14 = vld [vmem:[%s6161_s7 + $0x18] sm:$0xf] }
 0x21c   :  { %2421 = vmatmul.bf16.vlgmr.msrb.gmra.mxu0 %v5139_v45 }
 0x21d   :  { %2453 = vmatpush.bf16.msrb.mxu3 %v3117_v27  ;;  %2465 = vmatpush.bf16.msra.mxu0 %v3369_v28  ;;  %v4122_v27 = vld [vmem:[%s6161_s7 + $0x6a4] sm:$0xf]  ;;  %v3786_v28 = vld [vmem:[%s6161_s7 + $0x6bc] sm:$0xf0] }
 0x21e   :  { %2431 = vmatpush.bf16.msrb.mxu1 %v3449_v37  ;;  %2443 = vmatpush.bf16.msrb.mxu2 %v3701_v38  ;;  %v3789_v36 = vor.u32 %v4122_v27, %v3786_v28  ;;  %v3975_v37 = vld [vmem:[%s6161_s7 + $0x20c] sm:$0xf]  ;;  %v3198_v38 = vld [vmem:[%s6161_s7 + $0x224] sm:$0xf0]  ;;  %v3065_v27 = vor.u32 %v3944_v20, %v3064_v19  ;;  %v3512_v20 = vld [vmem:[%s6161_s7 + $0x478] sm:$0xf] }
 0x21f   :  { %v3201_v47 = vor.u32 %v3975_v37, %v3198_v38  ;;  %v4000_v37 = vld [vmem:[%s6161_s7 + $0x2d0] sm:$0xf0]  ;;  %v3979_v19 = vld [vmem:[%s6161_s7 + $0x228] sm:$0xf0] }
 0x221   :  { %2454 = vmatpush.bf16.msrb.mxu3 %v3089_v41  ;;  %2466 = vmatpush.bf16.msra.mxu0 %v3341_v42  ;;  %v4115_v41 = vld [vmem:[%s6161_s7 + $0x66c] sm:$0xf]  ;;  %v3758_v42 = vld [vmem:[%s6161_s7 + $0x684] sm:$0xf0] }
 0x222   :  { %2432 = vmatpush.bf16.msrb.mxu1 %v3421_v50  ;;  %2444 = vmatpush.bf16.msrb.mxu2 %v3673_v51  ;;  %v3761_v50 = vor.u32 %v4115_v41, %v3758_v42  ;;  %v3170_v51 = vld [vmem:[%s6161_s7 + $0x1ec] sm:$0xf0]  ;;  %v3397_v41 = vor.u32 %v4024_v25, %v3394_v26 }
 0x223   :  { %v3173_v61 = vor.u32 %v3968_v48, %v3170_v51  ;;  %v3008_v48 = vld [vmem:[%s6161_s7 + $0x88] sm:$0xf]  ;;  %v3260_v51 = vld [vmem:[%s6161_s7 + $0x280] sm:$0xf] }
 0x225   :  { %2455 = vmatpush.bf16.msrb.mxu3 %v3061_v54  ;;  %2467 = vmatpush.bf16.msra.mxu0 %v3313_v55  ;;  %v3149_v54 = vor.u32 %v3965_v44, %v3148_v43  ;;  %v4108_v55 = vld [vmem:[%s6161_s7 + $0x634] sm:$0xf] }
 0x226   :  { %2433 = vmatpush.bf16.msrb.mxu1 %v3393_v0  ;;  %2445 = vmatpush.bf16.msrb.mxu2 %v3645_v1  ;;  %v3733_v63 = vor.u32 %v4108_v55, %v3730_v56  ;;  %v4038_v0 = vld [vmem:[%s6161_s7 + $0x404] sm:$0xf]  ;;  %v3450_v1 = vld [vmem:[%s6161_s7 + $0x41c] sm:$0xf0]  ;;  %v4080_v43 = vld [vmem:[%s6161_s7 + $0x554] sm:$0xf] }
 0x227   :  { %v3453_v10 = vor.u32 %v4038_v0, %v3450_v1  ;;  %v3820_v55 = vld [vmem:[%s6161_s7 + $0x6e0] sm:$0xf]  ;;  %v4133_v56 = vld [vmem:[%s6161_s7 + $0x6f8] sm:$0xf0] }
 0x228   :  { %v3821_v1 = vor.u32 %v4133_v56, %v3820_v55  ;;  %v3428_v55 = vld [vmem:[%s6161_s7 + $0x3d0] sm:$0xf] }
 0x229   :  { %2456 = vmatpush.bf16.msrb.mxu3 %v3033_v3  ;;  %2468 = vmatpush.bf16.msra.mxu0 %v3285_v4  ;;  %v3373_v3 = vor.u32 %v4021_v60, %v3372_v59  ;;  %v4101_v4 = vld [vmem:[%s6161_s7 + $0x5fc] sm:$0xf]  ;;  %v3261_v60 = vor.u32 %v3993_v52, %v3260_v51 }
 0x22a   :  { %2478 = vmatpush.bf16.msra.mxu1 %v3593_v8  ;;  %2446 = vmatpush.bf16.msrb.mxu2 %v3617_v12  ;;  %v3344_v8 = vld [vmem:[%s6161_s7 + $0x328] sm:$0xf]  ;;  %v3705_v11 = vor.u32 %v4101_v4, %v3702_v5  ;;  %v3540_v4 = vld [vmem:[%s6161_s7 + $0x4b0] sm:$0xf] }
 0x22b   :  { %2434 = vmatmul.bf16.vlgmr.msrb.gmra.mxu1 %v5195_v18  ;;  %v3345_v12 = vor.u32 %v4014_v9, %v3344_v8  ;;  %v4126_v8 = vld [vmem:[%s6161_s7 + $0x6c0] sm:$0xf0]  ;;  %v1026_v9 = vperm.slane %v6006_v58, 0 }
 0x22d   :  { %2457 = vmatpush.bf16.msrb.mxu3 %v3005_v16  ;;  %2469 = vmatpush.bf16.msra.mxu0 %v3257_v17  ;;  %v4094_v16 = vld [vmem:[%s6161_s7 + $0x5c4] sm:$0xf]  ;;  %v3674_v17 = vld [vmem:[%s6161_s7 + $0x5dc] sm:$0xf0] }
 0x22e   :  { %2479 = vmatpush.bf16.msra.mxu1 %v3565_v21  ;;  %2491 = vmatpush.bf16.msra.mxu2 %v3817_v22  ;;  %v3316_v21 = vld [vmem:[%s6161_s7 + $0x2f0] sm:$0xf]  ;;  %v4007_v22 = vld [vmem:[%s6161_s7 + $0x308] sm:$0xf0]  ;;  %v3677_v24 = vor.u32 %v4094_v16, %v3674_v17  ;;  %v3793_v16 = vor.u32 %v4126_v8, %v3792_v7 }
 0x22f   :  { %2447 = vmatmul.bf16.vlgmr.msrb.gmra.mxu2 %v5217_v32  ;;  %v3317_v28 = vor.u32 %v4007_v22, %v3316_v21  ;;  %v3204_v17 = vld [vmem:[%s6161_s7 + $0x210] sm:$0xf]  ;;  %v4056_v21 = vld [vmem:[%s6161_s7 + $0x490] sm:$0xf0] }
 0x230   :  { %v3764_v22 = vld [vmem:[%s6161_s7 + $0x670] sm:$0xf]  ;;  %v3205_v26 = vor.u32 %v3979_v19, %v3204_v17 }
 0x231   :  { %2458 = vmatpush.bf16.msrb.mxu3 %v2977_v29  ;;  %2470 = vmatpush.bf16.msra.mxu0 %v3229_v30  ;;  %v4087_v30 = vld [vmem:[%s6161_s7 + $0x58c] sm:$0xf] }
 0x232   :  { %2480 = vmatpush.bf16.msra.mxu1 %v3537_v35  ;;  %2492 = vmatpush.bf16.msra.mxu2 %v3789_v36  ;;  %v3937_v35 = vld [vmem:[%s6161_s7 + $0xd8] sm:$0xf0]  ;;  %v3288_v36 = vld [vmem:[%s6161_s7 + $0x2b8] sm:$0xf]  ;;  %v3649_v42 = vor.u32 %v4087_v30, %v3646_v31 }
 0x233   :  { %v3037_v44 = vor.u32 %v3937_v35, %v3036_v34  ;;  %v3176_v31 = vld [vmem:[%s6161_s7 + $0x1d8] sm:$0xf]  ;;  %v3972_v34 = vld [vmem:[%s6161_s7 + $0x1f0] sm:$0xf0]  ;;  %v3484_v35 = vld [vmem:[%s6161_s7 + $0x440] sm:$0xf] }
 0x235   :  { %2459 = vmatpush.bf16.msrb.mxu3 %v2949_v46  ;;  %2471 = vmatpush.bf16.msra.mxu0 %v3201_v47  ;;  %v3289_v46 = vor.u32 %v4000_v37, %v3288_v36  ;;  %v3618_v47 = vld [vmem:[%s6161_s7 + $0x56c] sm:$0xf0]  ;;  %v4049_v37 = vld [vmem:[%s6161_s7 + $0x458] sm:$0xf0] }
 0x236   :  { %2481 = vmatpush.bf16.msra.mxu1 %v3509_v49  ;;  %2493 = vmatpush.bf16.msra.mxu2 %v3761_v50  ;;  %v3930_v49 = vld [vmem:[%s6161_s7 + $0xa0] sm:$0xf0]  ;;  %v3597_v50 = vor.u32 %v4077_v40, %v3596_v39  ;;  %v3621_v57 = vor.u32 %v4080_v43, %v3618_v47  ;;  %v4112_v39 = vld [vmem:[%s6161_s7 + $0x650] sm:$0xf0]  ;;  %v3456_v47 = vld [vmem:[%s6161_s7 + $0x408] sm:$0xf] }
 0x237   :  { %v3009_v59 = vor.u32 %v3930_v49, %v3008_v48  ;;  %v4042_v49 = vld [vmem:[%s6161_s7 + $0x420] sm:$0xf0] }
 0x238   :  { %2460 = vmatmul.bf16.vlgmr.msrb.gmra.mxu3 %v5124_v33 }
 0x239   :  { %2504 = vmatpush.bf16.msra.mxu3 %v3149_v54  ;;  %2472 = vmatpush.bf16.msra.mxu0 %v3173_v61  ;;  %v5945_v29 = vpop.f32.mrf.mxu0  ;;  %v4070_v54 = vld [vmem:[%s6161_s7 + $0x500] sm:$0xf0] }
 0x23a   :  { %2482 = vmatpush.bf16.msra.mxu1 %v3481_v62  ;;  %2494 = vmatpush.bf16.msra.mxu2 %v3733_v63  ;;  %v2980_v62 = vld [vmem:[%s6161_s7 + $0x50] sm:$0xf]  ;;  %v3923_v63 = vld [vmem:[%s6161_s7 + $0x68] sm:$0xf0]  ;;  %v3569_v0 = vor.u32 %v4070_v54, %v3568_v53  ;;  %v3457_v53 = vor.u32 %v4042_v49, %v3456_v47 }
 0x23b   :  { %v5965_v38 = vpop.f32.mrf.mxu3 }
 0x23c   :  { %2473 = vmatmul.bf16.vlgmr.msra.gmra.mxu0 %v5139_v45 }
 0x23d   :  { %2505 = vmatpush.bf16.msra.mxu3 %v3121_v2  ;;  %2517 = vmatpush.bf16.msrb.mxu0 %v3373_v3  ;;  %v3232_v2 = vld [vmem:[%s6161_s7 + $0x248] sm:$0xf]  ;;  %v3986_v3 = vld [vmem:[%s6161_s7 + $0x260] sm:$0xf0] }
 0x23e   :  { %2483 = vmatpush.bf16.msra.mxu1 %v3453_v10  ;;  %2495 = vmatpush.bf16.msra.mxu2 %v3705_v11  ;;  %v2981_v10 = vor.u32 %v3923_v63, %v2980_v62  ;;  %v3233_v11 = vor.u32 %v3986_v3, %v3232_v2  ;;  %v4028_v2 = vld [vmem:[%s6161_s7 + $0x3b0] sm:$0xf0]  ;;  %v3652_v3 = vld [vmem:[%s6161_s7 + $0x590] sm:$0xf] }
 0x241   :  { %2506 = vmatpush.bf16.msra.mxu3 %v3093_v15  ;;  %2518 = vmatpush.bf16.msrb.mxu0 %v3345_v12  ;;  %v2216_v61 = vpop.f32.mrf.mxu0  ;;  %v3916_v15 = vld [vmem:[%s6161_s7 + $0x30] sm:$0xf0]  ;;  %v3541_v12 = vor.u32 %v4063_v6, %v3540_v4 }
 0x242   :  { %2484 = vmatpush.bf16.msra.mxu1 %v3425_v23  ;;  %2496 = vmatpush.bf16.msra.mxu2 %v3677_v24  ;;  %v4119_v23 = vld [vmem:[%s6161_s7 + $0x688] sm:$0xf0]  ;;  %v2202_v24 = vadd.f32 %v5965_v38, %v1026_v9  ;;  %v2953_v25 = vor.u32 %v3916_v15, %v2952_v14  ;;  %v3736_v38 = vld [vmem:[%s6161_s7 + $0x638] sm:$0xf] }
 0x243   :  { %v2203_v5 = vpop.f32.mrf.mxu3  ;;  %v3765_v30 = vor.u32 %v4119_v23, %v3764_v22 }
 0x244   :  { %v2215_v40 = vadd.f32 %v5945_v29, %v2202_v24  ;;  %v3708_v29 = vld [vmem:[%s6161_s7 + $0x600] sm:$0xf] }
 0x245   :  { %2507 = vmatpush.bf16.msra.mxu3 %v3065_v27  ;;  %2519 = vmatpush.bf16.msrb.mxu0 %v3317_v28  ;;  %v2227_v13 = vpop.f32.mrf.mxu1  ;;  %v3513_v28 = vor.u32 %v4056_v21, %v3512_v20  ;;  %v1028_v21 = vperm.slane %v6006_v58, 2 }
 0x246   :  { %2485 = vmatpush.bf16.msra.mxu1 %v3397_v41  ;;  %2497 = vmatpush.bf16.msra.mxu2 %v3649_v42  ;;  %v3177_v41 = vor.u32 %v3972_v34, %v3176_v31  ;;  %v2228_v43 = vadd.f32 %v2227_v13, %v2215_v40 }
 0x249   :  { %2508 = vmatpush.bf16.msra.mxu3 %v3037_v44  ;;  %2520 = vmatpush.bf16.msrb.mxu0 %v3289_v46  ;;  %v6060_v27 = vpop.f32.mrf.mxu0  ;;  %v3485_v44 = vor.u32 %v4049_v37, %v3484_v35  ;;  %v3737_v46 = vor.u32 %v4112_v39, %v3736_v38  ;;  %v1029_v38 = vperm.slane %v6006_v58, 3 }
 0x24a   :  { %2530 = vmatpush.bf16.msrb.mxu1 %v3597_v50  ;;  %2498 = vmatpush.bf16.msra.mxu2 %v3621_v57  ;;  %v4105_v50 = vld [vmem:[%s6161_s7 + $0x618] sm:$0xf0]  ;;  %v4035_v57 = vld [vmem:[%s6161_s7 + $0x3e8] sm:$0xf0] }
 0x24b   :  { %2486 = vmatmul.bf16.vlgmr.msra.gmra.mxu1 %v5195_v18  ;;  %v2253_v36 = vpop.f32.mrf.mxu3  ;;  %v3709_v54 = vor.u32 %v4105_v50, %v3708_v29  ;;  %v3429_v62 = vor.u32 %v4035_v57, %v3428_v55 }
 0x24d   :  { %2509 = vmatpush.bf16.msra.mxu3 %v3009_v59  ;;  %2521 = vmatpush.bf16.msrb.mxu0 %v3261_v60  ;;  %v2229_v42 = vpop.f32.mrf.mxu1  ;;  %v4098_v59 = vld [vmem:[%s6161_s7 + $0x5e0] sm:$0xf0]  ;;  %v1027_v60 = vperm.slane %v6006_v58, 1 }
 0x24e   :  { %2531 = vmatpush.bf16.msrb.mxu1 %v3569_v0  ;;  %2543 = vmatpush.bf16.msrb.mxu2 %v3821_v1  ;;  %v3400_v0 = vld [vmem:[%s6161_s7 + $0x398] sm:$0xf] }
 0x24f   :  { %2499 = vmatmul.bf16.vlgmr.msra.gmra.mxu2 %v5217_v32  ;;  %v2240_v48 = vpop.f32.mrf.mxu2  ;;  %v2254_v5 = vadd.f32 %v2253_v36, %v1027_v60  ;;  %v3401_v7 = vor.u32 %v4028_v2, %v3400_v0  ;;  %v1031_v2 = vperm.slane %v6006_v58, 5 }
 0x250   :  { %v2241_v51 = vadd.f32 %v2240_v48, %v2228_v43 }
 0x251   :  { %2510 = vmatpush.bf16.msra.mxu3 %v2981_v10  ;;  %2522 = vmatpush.bf16.msrb.mxu0 %v3233_v11  ;;  %v2268_v52 = vpop.f32.mrf.mxu0  ;;  %v3624_v10 = vld [vmem:[%s6161_s7 + $0x558] sm:$0xf]  ;;  %v4084_v11 = vld [vmem:[%s6161_s7 + $0x570] sm:$0xf0]  ;;  %v2267_v13 = vadd.f32 %v6060_v27, %v2254_v5 }
 0x252   :  { %2532 = vmatpush.bf16.msrb.mxu1 %v3541_v12  ;;  %2544 = vmatpush.bf16.msrb.mxu2 %v3793_v16  ;;  %4135 = vtanh.f32 %v2241_v51  ;;  %v3625_v12 = vor.u32 %v4084_v11, %v3624_v10  ;;  %v1030_v52 = vperm.slane %v6006_v58, 4 }
 0x253   :  { %v2255_v56 = vpop.f32.mrf.mxu3 }
 0x255   :  { %2511 = vmatpush.bf16.msra.mxu3 %v2953_v25  ;;  %2523 = vmatpush.bf16.msrb.mxu0 %v3205_v26  ;;  %v2279_v61 = vpop.f32.mrf.mxu1 }
 0x256   :  { %2533 = vmatpush.bf16.msrb.mxu1 %v3513_v28  ;;  %2545 = vmatpush.bf16.msrb.mxu2 %v3765_v30  ;;  %v2280_v15 = vadd.f32 %v2279_v61, %v2267_v13 }
 0x257   :  { %v2242_v1 = vpop.f32.mrf.mxu2 }
 0x258   :  { %2512 = vmatmul.bf16.vlgmr.msra.gmra.mxu3 %v5124_v33  ;;  %v3680_v33 = vld [vmem:[%s6161_s7 + $0x5c8] sm:$0xf]  ;;  %v4136_v4 = vpop.eup %4135 }
 0x259   :  { %2524 = vmatpush.bf16.msrb.mxu0 %v3177_v41  ;;  %v3681_v63 = vor.u32 %v4098_v59, %v3680_v33  ;;  %2563 = vst [vmem:[%s6164_s9] sm:$0xff] %v4136_v4  ;;  %v2318_v6 = vpop.f32.mrf.mxu0 }
 0x25a   :  { %2534 = vmatpush.bf16.msrb.mxu1 %v3485_v44  ;;  %2546 = vmatpush.bf16.msrb.mxu2 %v3737_v46 }
 0x25b   :  { %v2305_v9 = vpop.f32.mrf.mxu3 }
 0x25c   :  { %2525 = vmatmul.bf16.vlgmr.msrb.gmra.mxu0 %v5139_v45  ;;  %v4091_v45 = vld [vmem:[%s6161_s7 + $0x5a8] sm:$0xf0]  ;;  %v2306_v25 = vadd.f32 %v2305_v9, %v1028_v21 }
 0x25d   :  { %v3653_v8 = vor.u32 %v4091_v45, %v3652_v3  ;;  %v2281_v14 = vpop.f32.mrf.mxu1 }
 0x25e   :  { %2535 = vmatpush.bf16.msrb.mxu1 %v3457_v53  ;;  %2547 = vmatpush.bf16.msrb.mxu2 %v3709_v54  ;;  %v2319_v26 = vadd.f32 %v2318_v6, %v2306_v25 }
 0x25f   :  { %v2292_v16 = vpop.f32.mrf.mxu2 }
 0x260   :  { %v2293_v17 = vadd.f32 %v2292_v16, %v2280_v15 }
 0x261   :  { %v2320_v19 = vpop.f32.mrf.mxu0 }
 0x262   :  { %2536 = vmatpush.bf16.msrb.mxu1 %v3429_v62  ;;  %2548 = vmatpush.bf16.msrb.mxu2 %v3681_v63  ;;  %4137 = vtanh.f32 %v2293_v17 }
 0x263   :  { %v2307_v20 = vpop.f32.mrf.mxu3 }
 0x266   :  { %2537 = vmatpush.bf16.msrb.mxu1 %v3401_v7  ;;  %2549 = vmatpush.bf16.msrb.mxu2 %v3653_v8 }
 0x267   :  { %v2294_v23 = vpop.f32.mrf.mxu2 }
 0x268   :  { %v2331_v22 = vpop.f32.mrf.mxu1  ;;  %v4138_v24 = vpop.eup %4137 }
 0x269   :  { %2538 = vmatmul.bf16.vlgmr.msrb.gmra.mxu1 %v5195_v18  ;;  %2564 = vst [vmem:[%s6164_s9 + $0x8] sm:$0xff] %v4138_v24  ;;  %v2332_v28 = vadd.f32 %v2331_v22, %v2319_v26 }
 0x26a   :  { %2550 = vmatpush.bf16.msrb.mxu2 %v3625_v12  ;;  %v1032_v12 = vperm.slane %v6006_v58, 6 }
 0x26d   :  { %2551 = vmatmul.bf16.vlgmr.msrb.gmra.mxu2 %v5217_v32 }
 0x270   :  { %v2333_v27 = vpop.f32.mrf.mxu1 }
 0x272   :  { %v2344_v18 = vpop.f32.mrf.mxu2 }
 0x273   :  { %v2345_v30 = vadd.f32 %v2344_v18, %v2332_v28 }
 0x275   :  { %4139 = vtanh.f32 %v2345_v30 }
 0x279   :  { %v2370_v31 = vpop.f32.mrf.mxu0 }
 0x27a   :  { %v2346_v34 = vpop.f32.mrf.mxu2 }
 0x27b   :  { %v4140_v35 = vpop.eup %4139  ;;  %v2357_v36 = vpop.f32.mrf.mxu3 }
 0x27c   :  { %2565 = vst [vmem:[%s6164_s9 + $0x10] sm:$0xff] %v4140_v35  ;;  %v2358_v40 = vadd.f32 %v2357_v36, %v1029_v38 }
 0x27e   :  { %v2371_v41 = vadd.f32 %v2370_v31, %v2358_v40 }
 0x281   :  { %v2372_v32 = vpop.f32.mrf.mxu0 }
 0x283   :  { %v2359_v37 = vpop.f32.mrf.mxu3 }
 0x288   :  { %v2383_v39 = vpop.f32.mrf.mxu1 }
 0x289   :  { %v2384_v43 = vadd.f32 %v2383_v39, %v2371_v41 }
 0x290   :  { %v2385_v42 = vpop.f32.mrf.mxu1 }
 0x292   :  { %v2396_v44 = vpop.f32.mrf.mxu2 }
 0x293   :  { %v2397_v46 = vadd.f32 %v2396_v44, %v2384_v43 }
 0x295   :  { %4141 = vtanh.f32 %v2397_v46 }
 0x299   :  { %v2422_v47 = vpop.f32.mrf.mxu0 }
 0x29a   :  { %v2398_v48 = vpop.f32.mrf.mxu2 }
 0x29b   :  { %v4142_v49 = vpop.eup %4141  ;;  %v2409_v29 = vpop.f32.mrf.mxu3 }
 0x29c   :  { %2566 = vst [vmem:[%s6164_s9 + $0x18] sm:$0xff] %v4142_v49  ;;  %v2410_v54 = vadd.f32 %v2409_v29, %v1030_v52 }
 0x29e   :  { %v2423_v55 = vadd.f32 %v2422_v47, %v2410_v54 }
 0x2a1   :  { %v2424_v50 = vpop.f32.mrf.mxu0 }
 0x2a3   :  { %v2411_v51 = vpop.f32.mrf.mxu3 }
 0x2a8   :  { %v2435_v53 = vpop.f32.mrf.mxu1 }
 0x2a9   :  { %v2436_v57 = vadd.f32 %v2435_v53, %v2423_v55 }
 0x2b0   :  { %v2437_v56 = vpop.f32.mrf.mxu1 }
 0x2b2   :  { %v2448_v33 = vpop.f32.mrf.mxu2 }
 0x2b3   :  { %v2449_v59 = vadd.f32 %v2448_v33, %v2436_v57 }
 0x2b5   :  { %4143 = vtanh.f32 %v2449_v59 }
 0x2b9   :  { %v2474_v60 = vpop.f32.mrf.mxu0 }
 0x2ba   :  { %v2450_v61 = vpop.f32.mrf.mxu2 }
 0x2bb   :  { %v4144_v62 = vpop.eup %4143  ;;  %v2461_v63 = vpop.f32.mrf.mxu3 }
 0x2bc   :  { %2567 = vst [vmem:[%s6164_s9 + $0x20] sm:$0xff] %v4144_v62  ;;  %v2462_v45 = vadd.f32 %v2461_v63, %v1031_v2 }
 0x2be   :  { %v2475_v4 = vadd.f32 %v2474_v60, %v2462_v45 }
 0x2c1   :  { %v2476_v0 = vpop.f32.mrf.mxu0 }
 0x2c3   :  { %v2463_v1 = vpop.f32.mrf.mxu3 }
 0x2c8   :  { %v2487_v3 = vpop.f32.mrf.mxu1 }
 0x2c9   :  { %v2488_v6 = vadd.f32 %v2487_v3, %v2475_v4 }
 0x2d0   :  { %v2489_v5 = vpop.f32.mrf.mxu1 }
 0x2d2   :  { %v2500_v7 = vpop.f32.mrf.mxu2 }
 0x2d3   :  { %v2501_v8 = vadd.f32 %v2500_v7, %v2488_v6 }
 0x2d5   :  { %4145 = vtanh.f32 %v2501_v8 }
 0x2d9   :  { %v2526_v9 = vpop.f32.mrf.mxu0 }
 0x2da   :  { %v2502_v10 = vpop.f32.mrf.mxu2 }
 0x2db   :  { %v4146_v11 = vpop.eup %4145  ;;  %v2513_v13 = vpop.f32.mrf.mxu3 }
 0x2dc   :  { %2568 = vst [vmem:[%s6164_s9 + $0x28] sm:$0xff] %v4146_v11  ;;  %v2514_v17 = vadd.f32 %v2513_v13, %v1032_v12 }
 0x2de   :  { %v2527_v19 = vadd.f32 %v2526_v9, %v2514_v17 }
 0x2e1   :  { %v2528_v14 = vpop.f32.mrf.mxu0 }
 0x2e3   :  { %v2515_v15 = vpop.f32.mrf.mxu3 }
 0x2e6   :  { %v2539_v16 = vpop.f32.mrf.mxu1 }
 0x2e7   :  { %v2540_v21 = vadd.f32 %v2539_v16, %v2527_v19 }
 0x2ee   :  { %v2541_v20 = vpop.f32.mrf.mxu1 }
 0x2f0   :  { %v2552_v22 = vpop.f32.mrf.mxu2 }
 0x2f1   :  { %v2553_v23 = vadd.f32 %v2552_v22, %v2540_v21 }
 0x2f3   :  { %4147 = vtanh.f32 %v2553_v23 }
 0x2f8   :  { %v2554_v24 = vpop.f32.mrf.mxu2 }
 0x2f9   :  { %v4148_v25 = vpop.eup %4147 }
 0x2fa   :  { %2569 = vst [vmem:[%s6164_s9 + $0x30] sm:$0xff] %v4148_v25 }

</bundles_post_ra>
